<compile_context>
chip_gen: v7x
topology: tpu7x:2x2x1
jax: 0.10.0
libtpu: 0.0.40
codegen_flags: <defaults>
</compile_context>

<pallas_src>
import jax
import jax.numpy as jnp
from jax.experimental import pallas as pl
from jax.experimental.pallas import tpu as pltpu

# ---------------- model hyper-parameters (small synthetic sizes) -------------
IN_CH = 4          # input_channels_node
HID = 32           # hidden_channels (H)
OUT_CH = 8         # output_channels
NUM_LAYERS = 3     # num_layers (outer convs and inner GGC steps)
N_NODES = 16
N_EDGES = 40
N_GRAPHS = 2

MXU_DTYPE = jnp.bfloat16   # MXU operand dtype; accumulation / gating stay f32

H4 = 4 * HID                           # 128 = one full lane width
NL0_IN = 8                             # node_lin input width, padded 7 -> 8
N_STEPS = NUM_LAYERS * NUM_LAYERS      # 9 fused GGC/GRU steps
# Row offsets inside the flat weight pack [W_ROWS, 128] (all multiples of 16).
OFF_NL0 = N_STEPS * 2 * HID            # 576: node_lin[0]  [8, 32]
OFF_NL1 = OFF_NL0 + 32                 # 608: node_lin[2]  [32, 32]
OFF_L1 = OFF_NL1 + 32                  # 640: lin1         [32, 16]
OFF_L2 = OFF_L1 + 32                   # 672: lin2         [16, 8]
W_ROWS = OFF_L2 + 32                   # 704
# Rows inside the flat f32 bias pack [8, 128].
B_NL0, B_NL1, B_L1, B_L2, B_GGC = 0, 1, 2, 3, 4   # B_GGC..B_GGC+2: per conv layer

_VMEM = pl.BlockSpec(memory_space=pltpu.MemorySpace.VMEM)


# ---------------------------- fused forward math ------------------------------
def _mm(a, b):
    """MXU matmul: bf16 operands, f32 accumulation."""
    return jnp.dot(a.astype(MXU_DTYPE), b.astype(MXU_DTYPE),
                   preferred_element_type=jnp.float32)


def _forward_math(h_in, adj, readout, w, b):
    """Entire GatedNet forward on VMEM-resident operands.

    `w` / `b` may be Pallas VMEM Refs (in-kernel) or plain arrays (XLA check);
    only static slicing is used, which behaves identically on both.
    """
    H = HID
    n = adj.shape[0]

    # node_lin: Linear -> ReLU -> Linear
    h = jnp.maximum(_mm(h_in, w[OFF_NL0:OFF_NL0 + NL0_IN, :H]) + b[B_NL0:B_NL0 + 1, :H], 0.0)
    h = _mm(h, w[OFF_NL1:OFF_NL1 + H, :H]) + b[B_NL1:B_NL1 + 1, :H]          # [N, H] f32

    # Stacked GatedGraphConv layers (3 convs x 3 inner GRU steps), unrolled.
    for li in range(NUM_LAYERS):
        # Hoisted per-layer bias broadcast (JAX does not CSE broadcast_in_dim).
        bias_l = jnp.broadcast_to(b[B_GGC + li:B_GGC + li + 1, :], (n, H4))  # [N, 4H]
        for si in range(NUM_LAYERS):
            step = li * NUM_LAYERS + si
            wp = w[step * 2 * H:(step + 1) * 2 * H, :]                       # [2H, 4H] view
            h_agg = _mm(adj, h)                                              # A @ h  (scatter-add)
            # One lane-dense [N, 2H] @ [2H, 128] matmul gives every gate
            # pre-activation: columns [ r | z | gi_n | gh_n ].
            pre = _mm(jnp.concatenate([h_agg, h], axis=1), wp) + bias_l      # [N, 4H]
            r = jax.nn.sigmoid(pre[:, 0:H])
            z = jax.nn.sigmoid(pre[:, H:2 * H])
            nn = jnp.tanh(pre[:, 2 * H:3 * H] + r * pre[:, 3 * H:4 * H])
            h = (1.0 - z) * nn + z * h                                       # GRU update (f32)
        h = jnp.maximum(h, 0.0)                                              # outer ReLU

    # head: lin1 -> ReLU -> lin2, then graph readout (onehot(batch) @ h).
    h = jnp.maximum(_mm(h, w[OFF_L1:OFF_L1 + H, :H // 2]) + b[B_L1:B_L1 + 1, :H // 2], 0.0)
    h = _mm(h, w[OFF_L2:OFF_L2 + H // 2, :OUT_CH]) + b[B_L2:B_L2 + 1, :OUT_CH]
    return _mm(readout, h)                                                   # [G, OUT_CH]


def _fused_forward_kernel(h_in_ref, adj_ref, readout_ref, w_ref, b_ref, out_ref):
    """Whole GatedNet forward in one gridless kernel; weights stay VMEM-resident."""
    out_ref[...] = _forward_math(h_in_ref[...], adj_ref[...], readout_ref[...],
                                 w_ref, b_ref).astype(out_ref.dtype)


# ---------------------------- parameter init ---------------------------------
def _xavier(key, shape):
    fan_in, fan_out = shape[-2], shape[-1]
    lim = (6.0 / (fan_in + fan_out)) ** 0.5
    return jax.random.uniform(key, shape, jnp.float32, -lim, lim)


def init_params(key):
    ks = iter(jax.random.split(key, 64))
    s_h = 1.0 / (HID ** 0.5)
    s_h2 = 1.0 / ((HID // 2) ** 0.5)
    p = {
        # node_lin: Linear(in+3, H) -> ReLU -> Linear(H, H); biases reset to 0.
        "nl0_w": _xavier(next(ks), (IN_CH + 3, HID)),
        "nl0_b": jnp.zeros((1, HID), jnp.float32),
        "nl1_w": _xavier(next(ks), (HID, HID)),
        "nl1_b": jnp.zeros((1, HID), jnp.float32),
        # head (PyTorch default Linear bias init).
        "lin1_w": _xavier(next(ks), (HID, HID // 2)),
        "lin1_b": jax.random.uniform(next(ks), (1, HID // 2), jnp.float32, -s_h, s_h),
        "lin2_w": _xavier(next(ks), (HID // 2, OUT_CH)),
        "lin2_b": jax.random.uniform(next(ks), (1, OUT_CH), jnp.float32, -s_h2, s_h2),
        "convs": [],
    }
    for _ in range(NUM_LAYERS):
        p["convs"].append({
            # GGC propagation weights [num_layers, H, H].
            "weight": _xavier(next(ks), (NUM_LAYERS, HID, HID)),
            # GRUCell params, stored transposed [H, 3H] (gate order r, z, n).
            "w_ih": jax.random.uniform(next(ks), (HID, 3 * HID), jnp.float32, -s_h, s_h),
            "w_hh": jax.random.uniform(next(ks), (HID, 3 * HID), jnp.float32, -s_h, s_h),
            "b_ih": jax.random.uniform(next(ks), (1, 3 * HID), jnp.float32, -s_h, s_h),
            "b_hh": jax.random.uniform(next(ks), (1, 3 * HID), jnp.float32, -s_h, s_h),
            # GatedGraphConv.edge_weight Linear is never used in forward -> omitted.
        })
    return p


def pack_params(params):
    """One-time host-side packing into two flat, kernel-friendly arrays.

    Weight pack [704, 128] (bf16):
      rows [0, 576): per (layer, step) Wp = [[W_i @ W_ih], [W_hh]] with output
        columns [ r | z | gi_n | gh_n ] (zeros where a source does not
        contribute), so  [hA | h] @ Wp + bias  yields all GRU pre-activations.
      rows 576..: node_lin[0] (8 rows), node_lin[2], lin1, lin2.
    Bias pack [8, 128] (f32): one row per linear + one packed GGC bias row per
      conv layer: [ b_ih+b_hh (r,z) | b_ih_n | b_hh_n ].
    """
    H = HID
    zero_h = jnp.zeros((H, H), jnp.float32)

    blocks = []
    for conv in params["convs"]:
        w_ih, w_hh = conv["w_ih"], conv["w_hh"]
        for si in range(NUM_LAYERS):
            wf = conv["weight"][si] @ w_ih                                 # fold W_i into W_ih
            top = jnp.concatenate([wf, zero_h], axis=1)                    # hA rows
            bot = jnp.concatenate([w_hh[:, :2 * H], zero_h, w_hh[:, 2 * H:]], axis=1)  # h rows
            blocks.append(jnp.concatenate([top, bot], axis=0))             # [2H, 4H]

    w_pack = jnp.zeros((W_ROWS, H4), jnp.float32)
    w_pack = w_pack.at[:OFF_NL0].set(jnp.concatenate(blocks, axis=0))
    w_pack = w_pack.at[OFF_NL0:OFF_NL0 + IN_CH + 3, :H].set(params["nl0_w"])
    w_pack = w_pack.at[OFF_NL1:OFF_NL1 + H, :H].set(params["nl1_w"])
    w_pack = w_pack.at[OFF_L1:OFF_L1 + H, :H // 2].set(params["lin1_w"])
    w_pack = w_pack.at[OFF_L2:OFF_L2 + H // 2, :OUT_CH].set(params["lin2_w"])

    b_pack = jnp.zeros((8, H4), jnp.float32)
    b_pack = b_pack.at[B_NL0, :H].set(params["nl0_b"][0])
    b_pack = b_pack.at[B_NL1, :H].set(params["nl1_b"][0])
    b_pack = b_pack.at[B_L1, :H // 2].set(params["lin1_b"][0])
    b_pack = b_pack.at[B_L2, :OUT_CH].set(params["lin2_b"][0])
    for li, conv in enumerate(params["convs"]):
        b_ih, b_hh = conv["b_ih"][0], conv["b_hh"][0]
        b_pack = b_pack.at[B_GGC + li].set(
            jnp.concatenate([b_ih[:2 * H] + b_hh[:2 * H], b_ih[2 * H:], b_hh[2 * H:]]))
    return w_pack.astype(MXU_DTYPE), b_pack


# ------------------------------ full forward ---------------------------------
def prepare_inputs(x, pos, adj, batch_onehot):
    n = x.shape[0]
    pad = NL0_IN - (IN_CH + 3)
    h_in = jnp.concatenate([x, pos, jnp.zeros((n, pad), jnp.float32)], axis=1)
    return h_in, adj.astype(MXU_DTYPE), batch_onehot.astype(MXU_DTYPE)


def gated_net_forward(w_pack, b_pack, h_in, adj_mx, readout_mx):
    return pl.pallas_call(
        _fused_forward_kernel,
        out_shape=jax.ShapeDtypeStruct((N_GRAPHS, OUT_CH), jnp.float32),
        in_specs=[_VMEM] * 5,
        out_specs=_VMEM,
    )(h_in, adj_mx, readout_mx, w_pack, b_pack)


def reference_forward(params, x, pos, adj, batch_onehot):
    """Pure-f32 JAX reference following the PyTorch module structure."""
    h = jnp.concatenate([x, pos], axis=1)
    h = jnp.maximum(h @ params["nl0_w"] + params["nl0_b"], 0.0)
    h = h @ params["nl1_w"] + params["nl1_b"]
    for conv in params["convs"]:
        for i in range(NUM_LAYERS):
            m = adj @ (h @ conv["weight"][i])
            gi = m @ conv["w_ih"] + conv["b_ih"]
            gh = h @ conv["w_hh"] + conv["b_hh"]
            r = jax.nn.sigmoid(gi[:, :HID] + gh[:, :HID])
            z = jax.nn.sigmoid(gi[:, HID:2 * HID] + gh[:, HID:2 * HID])
            nn = jnp.tanh(gi[:, 2 * HID:] + r * gh[:, 2 * HID:])
            h = (1.0 - z) * nn + z * h
        h = jnp.maximum(h, 0.0)
    h = jnp.maximum(h @ params["lin1_w"] + params["lin1_b"], 0.0)
    h = h @ params["lin2_w"] + params["lin2_b"]
    return batch_onehot @ h


# ---------------------------------- main --------------------------------------
if __name__ == "__main__":
    key = jax.random.PRNGKey(0)
    kx, kp, ke, kparam = jax.random.split(key, 4)

    x = jax.random.normal(kx, (N_NODES, IN_CH), jnp.float32)
    pos = jax.random.normal(kp, (N_NODES, 3), jnp.float32)
    edge_index = jax.random.randint(ke, (2, N_EDGES), 0, N_NODES)
    batch = jnp.concatenate([jnp.zeros(N_NODES // 2, jnp.int32),
                             jnp.ones(N_NODES - N_NODES // 2, jnp.int32)])

    # Dense adjacency for scatter-add aggregation: A[dst, src] += 1 per edge.
    adj = jnp.zeros((N_NODES, N_NODES), jnp.float32).at[
        edge_index[1], edge_index[0]].add(1.0)
    # Readout scatter matrix: [num_graphs, N].
    batch_onehot = jax.nn.one_hot(batch, N_GRAPHS, dtype=jnp.float32).T

    params = init_params(kparam)
    w_pack, b_pack = pack_params(params)
    h_in, adj_mx, readout_mx = prepare_inputs(x, pos, adj, batch_onehot)

    out = jax.block_until_ready(
        gated_net_forward(w_pack, b_pack, h_in, adj_mx, readout_mx))
    assert out.shape == (N_GRAPHS, OUT_CH)

    # 1) Tight structural check: identical packed bf16-operand math run by XLA.
    ref_packed = _forward_math(h_in, adj_mx, readout_mx, w_pack, b_pack)
    assert jnp.allclose(out, ref_packed, atol=2e-3, rtol=2e-3), "mismatch vs packed math"

    # 2) Semantic check vs the pure-f32 module reference; tolerance accommodates
    #    bf16 MXU operands compounding across the 9 chained GRU steps.
    ref = reference_forward(params, x, pos, adj, batch_onehot)
    assert jnp.allclose(out, ref, atol=1e-1, rtol=1e-1), "mismatch vs f32 reference"

    print("KERNEL_OK")
</pallas_src>

<mosaic_0001>
module attributes {stable_mosaic.version = 11 : i64} {
  func.func @_fused_forward_kernel(%arg0: memref<16x8xf32, #tpu.memory_space<vmem>>, %arg1: memref<16x16xbf16, #tpu.memory_space<vmem>>, %arg2: memref<2x16xbf16, #tpu.memory_space<vmem>>, %arg3: memref<704x128xbf16, #tpu.memory_space<vmem>>, %arg4: memref<8x128xf32, #tpu.memory_space<vmem>>, %arg5: memref<2x8xf32, #tpu.memory_space<vmem>>) attributes {dimension_semantics = [], scalar_prefetch = 0 : i64, scratch_operands = 0 : i64, tpu.core_type = #tpu.core_type<tc>} {
    %c0 = arith.constant 0 : index
    %c0_0 = arith.constant 0 : index
    %0 = vector.load %arg0[%c0, %c0_0] : memref<16x8xf32, #tpu.memory_space<vmem>>, vector<16x8xf32>
    %c0_1 = arith.constant 0 : index
    %c0_2 = arith.constant 0 : index
    %1 = vector.load %arg1[%c0_1, %c0_2] : memref<16x16xbf16, #tpu.memory_space<vmem>>, vector<16x16xbf16>
    %c0_3 = arith.constant 0 : index
    %c0_4 = arith.constant 0 : index
    %2 = vector.load %arg2[%c0_3, %c0_4] : memref<2x16xbf16, #tpu.memory_space<vmem>>, vector<2x16xbf16>
    %c576 = arith.constant 576 : index
    %c0_5 = arith.constant 0 : index
    %3 = vector.load %arg3[%c576, %c0_5] : memref<704x128xbf16, #tpu.memory_space<vmem>>, vector<8x32xbf16>
    %4 = arith.truncf %0 : vector<16x8xf32> to vector<16x8xbf16>
    %cst = arith.constant dense<0.000000e+00> : vector<16x32xf32>
    %5 = tpu.matmul %4, %3, %cst {dimension_numbers = #tpu.dot_dimension_numbers<[1], [0], [0], [1], [0, 0, 1, 1], [], []>} : vector<16x8xbf16>, vector<8x32xbf16>, vector<16x32xf32> -> vector<16x32xf32>
    %c0_6 = arith.constant 0 : index
    %c0_7 = arith.constant 0 : index
    %6 = vector.load %arg4[%c0_6, %c0_7] : memref<8x128xf32, #tpu.memory_space<vmem>>, vector<1x32xf32>
    %7 = vector.broadcast %6 : vector<1x32xf32> to vector<16x32xf32>
    %8 = arith.addf %5, %7 : vector<16x32xf32>
    %cst_8 = arith.constant 0.000000e+00 : f32
    %9 = vector.broadcast %cst_8 : f32 to vector<16x32xf32>
    %10 = arith.maximumf %8, %9 : vector<16x32xf32>
    %c608 = arith.constant 608 : index
    %c0_9 = arith.constant 0 : index
    %11 = vector.load %arg3[%c608, %c0_9] : memref<704x128xbf16, #tpu.memory_space<vmem>>, vector<32x32xbf16>
    %12 = arith.truncf %10 : vector<16x32xf32> to vector<16x32xbf16>
    %cst_10 = arith.constant dense<0.000000e+00> : vector<16x32xf32>
    %13 = tpu.matmul %12, %11, %cst_10 {dimension_numbers = #tpu.dot_dimension_numbers<[1], [0], [0], [1], [0, 0, 1, 1], [], []>} : vector<16x32xbf16>, vector<32x32xbf16>, vector<16x32xf32> -> vector<16x32xf32>
    %c1 = arith.constant 1 : index
    %c0_11 = arith.constant 0 : index
    %14 = vector.load %arg4[%c1, %c0_11] : memref<8x128xf32, #tpu.memory_space<vmem>>, vector<1x32xf32>
    %15 = vector.broadcast %14 : vector<1x32xf32> to vector<16x32xf32>
    %16 = arith.addf %13, %15 : vector<16x32xf32>
    %c4 = arith.constant 4 : index
    %c0_12 = arith.constant 0 : index
    %17 = vector.load %arg4[%c4, %c0_12] : memref<8x128xf32, #tpu.memory_space<vmem>>, vector<1x128xf32>
    %18 = vector.shape_cast %17 : vector<1x128xf32> to vector<1x128xf32>
    %19 = vector.broadcast %18 : vector<1x128xf32> to vector<16x128xf32>
    %c0_13 = arith.constant 0 : index
    %c0_14 = arith.constant 0 : index
    %20 = vector.load %arg3[%c0_13, %c0_14] : memref<704x128xbf16, #tpu.memory_space<vmem>>, vector<64x128xbf16>
    %21 = arith.truncf %16 : vector<16x32xf32> to vector<16x32xbf16>
    %cst_15 = arith.constant dense<0.000000e+00> : vector<16x32xf32>
    %22 = tpu.matmul %1, %21, %cst_15 {dimension_numbers = #tpu.dot_dimension_numbers<[1], [0], [0], [1], [0, 0, 1, 1], [], []>} : vector<16x16xbf16>, vector<16x32xbf16>, vector<16x32xf32> -> vector<16x32xf32>
    %23 = tpu.concatenate %22, %16 in 1 : vector<16x32xf32>, vector<16x32xf32> -> vector<16x64xf32>
    %24 = arith.truncf %23 : vector<16x64xf32> to vector<16x64xbf16>
    %cst_16 = arith.constant dense<0.000000e+00> : vector<16x128xf32>
    %25 = tpu.matmul %24, %20, %cst_16 {dimension_numbers = #tpu.dot_dimension_numbers<[1], [0], [0], [1], [0, 0, 1, 1], [], []>} : vector<16x64xbf16>, vector<64x128xbf16>, vector<16x128xf32> -> vector<16x128xf32>
    %26 = arith.addf %25, %19 : vector<16x128xf32>
    %27 = vector.extract_strided_slice %26 {offsets = [0, 0], sizes = [16, 32], strides = [1, 1]} : vector<16x128xf32> to vector<16x32xf32>
    %28 = arith.negf %27 : vector<16x32xf32>
    %29 = math.exp %28 : vector<16x32xf32>
    %cst_17 = arith.constant 1.000000e+00 : f32
    %30 = vector.broadcast %cst_17 : f32 to vector<16x32xf32>
    %31 = arith.addf %30, %29 : vector<16x32xf32>
    %32 = arith.divf %30, %31 : vector<16x32xf32>
    %33 = vector.extract_strided_slice %26 {offsets = [0, 32], sizes = [16, 32], strides = [1, 1]} : vector<16x128xf32> to vector<16x32xf32>
    %34 = arith.negf %33 : vector<16x32xf32>
    %35 = math.exp %34 : vector<16x32xf32>
    %cst_18 = arith.constant 1.000000e+00 : f32
    %36 = vector.broadcast %cst_18 : f32 to vector<16x32xf32>
    %37 = arith.addf %36, %35 : vector<16x32xf32>
    %38 = arith.divf %36, %37 : vector<16x32xf32>
    %39 = vector.extract_strided_slice %26 {offsets = [0, 64], sizes = [16, 32], strides = [1, 1]} : vector<16x128xf32> to vector<16x32xf32>
    %40 = vector.extract_strided_slice %26 {offsets = [0, 96], sizes = [16, 32], strides = [1, 1]} : vector<16x128xf32> to vector<16x32xf32>
    %41 = arith.mulf %32, %40 : vector<16x32xf32>
    %42 = arith.addf %39, %41 : vector<16x32xf32>
    %43 = math.tanh %42 : vector<16x32xf32>
    %cst_19 = arith.constant 1.000000e+00 : f32
    %44 = vector.broadcast %cst_19 : f32 to vector<16x32xf32>
    %45 = arith.subf %44, %38 : vector<16x32xf32>
    %46 = arith.mulf %45, %43 : vector<16x32xf32>
    %47 = arith.mulf %38, %16 : vector<16x32xf32>
    %48 = arith.addf %46, %47 : vector<16x32xf32>
    %c64 = arith.constant 64 : index
    %c0_20 = arith.constant 0 : index
    %49 = vector.load %arg3[%c64, %c0_20] : memref<704x128xbf16, #tpu.memory_space<vmem>>, vector<64x128xbf16>
    %50 = arith.truncf %48 : vector<16x32xf32> to vector<16x32xbf16>
    %cst_21 = arith.constant dense<0.000000e+00> : vector<16x32xf32>
    %51 = tpu.matmul %1, %50, %cst_21 {dimension_numbers = #tpu.dot_dimension_numbers<[1], [0], [0], [1], [0, 0, 1, 1], [], []>} : vector<16x16xbf16>, vector<16x32xbf16>, vector<16x32xf32> -> vector<16x32xf32>
    %52 = tpu.concatenate %51, %48 in 1 : vector<16x32xf32>, vector<16x32xf32> -> vector<16x64xf32>
    %53 = arith.truncf %52 : vector<16x64xf32> to vector<16x64xbf16>
    %cst_22 = arith.constant dense<0.000000e+00> : vector<16x128xf32>
    %54 = tpu.matmul %53, %49, %cst_22 {dimension_numbers = #tpu.dot_dimension_numbers<[1], [0], [0], [1], [0, 0, 1, 1], [], []>} : vector<16x64xbf16>, vector<64x128xbf16>, vector<16x128xf32> -> vector<16x128xf32>
    %55 = arith.addf %54, %19 : vector<16x128xf32>
    %56 = vector.extract_strided_slice %55 {offsets = [0, 0], sizes = [16, 32], strides = [1, 1]} : vector<16x128xf32> to vector<16x32xf32>
    %57 = arith.negf %56 : vector<16x32xf32>
    %58 = math.exp %57 : vector<16x32xf32>
    %cst_23 = arith.constant 1.000000e+00 : f32
    %59 = vector.broadcast %cst_23 : f32 to vector<16x32xf32>
    %60 = arith.addf %59, %58 : vector<16x32xf32>
    %61 = arith.divf %59, %60 : vector<16x32xf32>
    %62 = vector.extract_strided_slice %55 {offsets = [0, 32], sizes = [16, 32], strides = [1, 1]} : vector<16x128xf32> to vector<16x32xf32>
    %63 = arith.negf %62 : vector<16x32xf32>
    %64 = math.exp %63 : vector<16x32xf32>
    %cst_24 = arith.constant 1.000000e+00 : f32
    %65 = vector.broadcast %cst_24 : f32 to vector<16x32xf32>
    %66 = arith.addf %65, %64 : vector<16x32xf32>
    %67 = arith.divf %65, %66 : vector<16x32xf32>
    %68 = vector.extract_strided_slice %55 {offsets = [0, 64], sizes = [16, 32], strides = [1, 1]} : vector<16x128xf32> to vector<16x32xf32>
    %69 = vector.extract_strided_slice %55 {offsets = [0, 96], sizes = [16, 32], strides = [1, 1]} : vector<16x128xf32> to vector<16x32xf32>
    %70 = arith.mulf %61, %69 : vector<16x32xf32>
    %71 = arith.addf %68, %70 : vector<16x32xf32>
    %72 = math.tanh %71 : vector<16x32xf32>
    %cst_25 = arith.constant 1.000000e+00 : f32
    %73 = vector.broadcast %cst_25 : f32 to vector<16x32xf32>
    %74 = arith.subf %73, %67 : vector<16x32xf32>
    %75 = arith.mulf %74, %72 : vector<16x32xf32>
    %76 = arith.mulf %67, %48 : vector<16x32xf32>
    %77 = arith.addf %75, %76 : vector<16x32xf32>
    %c128 = arith.constant 128 : index
    %c0_26 = arith.constant 0 : index
    %78 = vector.load %arg3[%c128, %c0_26] : memref<704x128xbf16, #tpu.memory_space<vmem>>, vector<64x128xbf16>
    %79 = arith.truncf %77 : vector<16x32xf32> to vector<16x32xbf16>
    %cst_27 = arith.constant dense<0.000000e+00> : vector<16x32xf32>
    %80 = tpu.matmul %1, %79, %cst_27 {dimension_numbers = #tpu.dot_dimension_numbers<[1], [0], [0], [1], [0, 0, 1, 1], [], []>} : vector<16x16xbf16>, vector<16x32xbf16>, vector<16x32xf32> -> vector<16x32xf32>
    %81 = tpu.concatenate %80, %77 in 1 : vector<16x32xf32>, vector<16x32xf32> -> vector<16x64xf32>
    %82 = arith.truncf %81 : vector<16x64xf32> to vector<16x64xbf16>
    %cst_28 = arith.constant dense<0.000000e+00> : vector<16x128xf32>
    %83 = tpu.matmul %82, %78, %cst_28 {dimension_numbers = #tpu.dot_dimension_numbers<[1], [0], [0], [1], [0, 0, 1, 1], [], []>} : vector<16x64xbf16>, vector<64x128xbf16>, vector<16x128xf32> -> vector<16x128xf32>
    %84 = arith.addf %83, %19 : vector<16x128xf32>
    %85 = vector.extract_strided_slice %84 {offsets = [0, 0], sizes = [16, 32], strides = [1, 1]} : vector<16x128xf32> to vector<16x32xf32>
    %86 = arith.negf %85 : vector<16x32xf32>
    %87 = math.exp %86 : vector<16x32xf32>
    %cst_29 = arith.constant 1.000000e+00 : f32
    %88 = vector.broadcast %cst_29 : f32 to vector<16x32xf32>
    %89 = arith.addf %88, %87 : vector<16x32xf32>
    %90 = arith.divf %88, %89 : vector<16x32xf32>
    %91 = vector.extract_strided_slice %84 {offsets = [0, 32], sizes = [16, 32], strides = [1, 1]} : vector<16x128xf32> to vector<16x32xf32>
    %92 = arith.negf %91 : vector<16x32xf32>
    %93 = math.exp %92 : vector<16x32xf32>
    %cst_30 = arith.constant 1.000000e+00 : f32
    %94 = vector.broadcast %cst_30 : f32 to vector<16x32xf32>
    %95 = arith.addf %94, %93 : vector<16x32xf32>
    %96 = arith.divf %94, %95 : vector<16x32xf32>
    %97 = vector.extract_strided_slice %84 {offsets = [0, 64], sizes = [16, 32], strides = [1, 1]} : vector<16x128xf32> to vector<16x32xf32>
    %98 = vector.extract_strided_slice %84 {offsets = [0, 96], sizes = [16, 32], strides = [1, 1]} : vector<16x128xf32> to vector<16x32xf32>
    %99 = arith.mulf %90, %98 : vector<16x32xf32>
    %100 = arith.addf %97, %99 : vector<16x32xf32>
    %101 = math.tanh %100 : vector<16x32xf32>
    %cst_31 = arith.constant 1.000000e+00 : f32
    %102 = vector.broadcast %cst_31 : f32 to vector<16x32xf32>
    %103 = arith.subf %102, %96 : vector<16x32xf32>
    %104 = arith.mulf %103, %101 : vector<16x32xf32>
    %105 = arith.mulf %96, %77 : vector<16x32xf32>
    %106 = arith.addf %104, %105 : vector<16x32xf32>
    %cst_32 = arith.constant 0.000000e+00 : f32
    %107 = vector.broadcast %cst_32 : f32 to vector<16x32xf32>
    %108 = arith.maximumf %106, %107 : vector<16x32xf32>
    %c5 = arith.constant 5 : index
    %c0_33 = arith.constant 0 : index
    %109 = vector.load %arg4[%c5, %c0_33] : memref<8x128xf32, #tpu.memory_space<vmem>>, vector<1x128xf32>
    %110 = vector.shape_cast %109 : vector<1x128xf32> to vector<1x128xf32>
    %111 = vector.broadcast %110 : vector<1x128xf32> to vector<16x128xf32>
    %c192 = arith.constant 192 : index
    %c0_34 = arith.constant 0 : index
    %112 = vector.load %arg3[%c192, %c0_34] : memref<704x128xbf16, #tpu.memory_space<vmem>>, vector<64x128xbf16>
    %113 = arith.truncf %108 : vector<16x32xf32> to vector<16x32xbf16>
    %cst_35 = arith.constant dense<0.000000e+00> : vector<16x32xf32>
    %114 = tpu.matmul %1, %113, %cst_35 {dimension_numbers = #tpu.dot_dimension_numbers<[1], [0], [0], [1], [0, 0, 1, 1], [], []>} : vector<16x16xbf16>, vector<16x32xbf16>, vector<16x32xf32> -> vector<16x32xf32>
    %115 = tpu.concatenate %114, %108 in 1 : vector<16x32xf32>, vector<16x32xf32> -> vector<16x64xf32>
    %116 = arith.truncf %115 : vector<16x64xf32> to vector<16x64xbf16>
    %cst_36 = arith.constant dense<0.000000e+00> : vector<16x128xf32>
    %117 = tpu.matmul %116, %112, %cst_36 {dimension_numbers = #tpu.dot_dimension_numbers<[1], [0], [0], [1], [0, 0, 1, 1], [], []>} : vector<16x64xbf16>, vector<64x128xbf16>, vector<16x128xf32> -> vector<16x128xf32>
    %118 = arith.addf %117, %111 : vector<16x128xf32>
    %119 = vector.extract_strided_slice %118 {offsets = [0, 0], sizes = [16, 32], strides = [1, 1]} : vector<16x128xf32> to vector<16x32xf32>
    %120 = arith.negf %119 : vector<16x32xf32>
    %121 = math.exp %120 : vector<16x32xf32>
    %cst_37 = arith.constant 1.000000e+00 : f32
    %122 = vector.broadcast %cst_37 : f32 to vector<16x32xf32>
    %123 = arith.addf %122, %121 : vector<16x32xf32>
    %124 = arith.divf %122, %123 : vector<16x32xf32>
    %125 = vector.extract_strided_slice %118 {offsets = [0, 32], sizes = [16, 32], strides = [1, 1]} : vector<16x128xf32> to vector<16x32xf32>
    %126 = arith.negf %125 : vector<16x32xf32>
    %127 = math.exp %126 : vector<16x32xf32>
    %cst_38 = arith.constant 1.000000e+00 : f32
    %128 = vector.broadcast %cst_38 : f32 to vector<16x32xf32>
    %129 = arith.addf %128, %127 : vector<16x32xf32>
    %130 = arith.divf %128, %129 : vector<16x32xf32>
    %131 = vector.extract_strided_slice %118 {offsets = [0, 64], sizes = [16, 32], strides = [1, 1]} : vector<16x128xf32> to vector<16x32xf32>
    %132 = vector.extract_strided_slice %118 {offsets = [0, 96], sizes = [16, 32], strides = [1, 1]} : vector<16x128xf32> to vector<16x32xf32>
    %133 = arith.mulf %124, %132 : vector<16x32xf32>
    %134 = arith.addf %131, %133 : vector<16x32xf32>
    %135 = math.tanh %134 : vector<16x32xf32>
    %cst_39 = arith.constant 1.000000e+00 : f32
    %136 = vector.broadcast %cst_39 : f32 to vector<16x32xf32>
    %137 = arith.subf %136, %130 : vector<16x32xf32>
    %138 = arith.mulf %137, %135 : vector<16x32xf32>
    %139 = arith.mulf %130, %108 : vector<16x32xf32>
    %140 = arith.addf %138, %139 : vector<16x32xf32>
    %c256 = arith.constant 256 : index
    %c0_40 = arith.constant 0 : index
    %141 = vector.load %arg3[%c256, %c0_40] : memref<704x128xbf16, #tpu.memory_space<vmem>>, vector<64x128xbf16>
    %142 = arith.truncf %140 : vector<16x32xf32> to vector<16x32xbf16>
    %cst_41 = arith.constant dense<0.000000e+00> : vector<16x32xf32>
    %143 = tpu.matmul %1, %142, %cst_41 {dimension_numbers = #tpu.dot_dimension_numbers<[1], [0], [0], [1], [0, 0, 1, 1], [], []>} : vector<16x16xbf16>, vector<16x32xbf16>, vector<16x32xf32> -> vector<16x32xf32>
    %144 = tpu.concatenate %143, %140 in 1 : vector<16x32xf32>, vector<16x32xf32> -> vector<16x64xf32>
    %145 = arith.truncf %144 : vector<16x64xf32> to vector<16x64xbf16>
    %cst_42 = arith.constant dense<0.000000e+00> : vector<16x128xf32>
    %146 = tpu.matmul %145, %141, %cst_42 {dimension_numbers = #tpu.dot_dimension_numbers<[1], [0], [0], [1], [0, 0, 1, 1], [], []>} : vector<16x64xbf16>, vector<64x128xbf16>, vector<16x128xf32> -> vector<16x128xf32>
    %147 = arith.addf %146, %111 : vector<16x128xf32>
    %148 = vector.extract_strided_slice %147 {offsets = [0, 0], sizes = [16, 32], strides = [1, 1]} : vector<16x128xf32> to vector<16x32xf32>
    %149 = arith.negf %148 : vector<16x32xf32>
    %150 = math.exp %149 : vector<16x32xf32>
    %cst_43 = arith.constant 1.000000e+00 : f32
    %151 = vector.broadcast %cst_43 : f32 to vector<16x32xf32>
    %152 = arith.addf %151, %150 : vector<16x32xf32>
    %153 = arith.divf %151, %152 : vector<16x32xf32>
    %154 = vector.extract_strided_slice %147 {offsets = [0, 32], sizes = [16, 32], strides = [1, 1]} : vector<16x128xf32> to vector<16x32xf32>
    %155 = arith.negf %154 : vector<16x32xf32>
    %156 = math.exp %155 : vector<16x32xf32>
    %cst_44 = arith.constant 1.000000e+00 : f32
    %157 = vector.broadcast %cst_44 : f32 to vector<16x32xf32>
    %158 = arith.addf %157, %156 : vector<16x32xf32>
    %159 = arith.divf %157, %158 : vector<16x32xf32>
    %160 = vector.extract_strided_slice %147 {offsets = [0, 64], sizes = [16, 32], strides = [1, 1]} : vector<16x128xf32> to vector<16x32xf32>
    %161 = vector.extract_strided_slice %147 {offsets = [0, 96], sizes = [16, 32], strides = [1, 1]} : vector<16x128xf32> to vector<16x32xf32>
    %162 = arith.mulf %153, %161 : vector<16x32xf32>
    %163 = arith.addf %160, %162 : vector<16x32xf32>
    %164 = math.tanh %163 : vector<16x32xf32>
    %cst_45 = arith.constant 1.000000e+00 : f32
    %165 = vector.broadcast %cst_45 : f32 to vector<16x32xf32>
    %166 = arith.subf %165, %159 : vector<16x32xf32>
    %167 = arith.mulf %166, %164 : vector<16x32xf32>
    %168 = arith.mulf %159, %140 : vector<16x32xf32>
    %169 = arith.addf %167, %168 : vector<16x32xf32>
    %c320 = arith.constant 320 : index
    %c0_46 = arith.constant 0 : index
    %170 = vector.load %arg3[%c320, %c0_46] : memref<704x128xbf16, #tpu.memory_space<vmem>>, vector<64x128xbf16>
    %171 = arith.truncf %169 : vector<16x32xf32> to vector<16x32xbf16>
    %cst_47 = arith.constant dense<0.000000e+00> : vector<16x32xf32>
    %172 = tpu.matmul %1, %171, %cst_47 {dimension_numbers = #tpu.dot_dimension_numbers<[1], [0], [0], [1], [0, 0, 1, 1], [], []>} : vector<16x16xbf16>, vector<16x32xbf16>, vector<16x32xf32> -> vector<16x32xf32>
    %173 = tpu.concatenate %172, %169 in 1 : vector<16x32xf32>, vector<16x32xf32> -> vector<16x64xf32>
    %174 = arith.truncf %173 : vector<16x64xf32> to vector<16x64xbf16>
    %cst_48 = arith.constant dense<0.000000e+00> : vector<16x128xf32>
    %175 = tpu.matmul %174, %170, %cst_48 {dimension_numbers = #tpu.dot_dimension_numbers<[1], [0], [0], [1], [0, 0, 1, 1], [], []>} : vector<16x64xbf16>, vector<64x128xbf16>, vector<16x128xf32> -> vector<16x128xf32>
    %176 = arith.addf %175, %111 : vector<16x128xf32>
    %177 = vector.extract_strided_slice %176 {offsets = [0, 0], sizes = [16, 32], strides = [1, 1]} : vector<16x128xf32> to vector<16x32xf32>
    %178 = arith.negf %177 : vector<16x32xf32>
    %179 = math.exp %178 : vector<16x32xf32>
    %cst_49 = arith.constant 1.000000e+00 : f32
    %180 = vector.broadcast %cst_49 : f32 to vector<16x32xf32>
    %181 = arith.addf %180, %179 : vector<16x32xf32>
    %182 = arith.divf %180, %181 : vector<16x32xf32>
    %183 = vector.extract_strided_slice %176 {offsets = [0, 32], sizes = [16, 32], strides = [1, 1]} : vector<16x128xf32> to vector<16x32xf32>
    %184 = arith.negf %183 : vector<16x32xf32>
    %185 = math.exp %184 : vector<16x32xf32>
    %cst_50 = arith.constant 1.000000e+00 : f32
    %186 = vector.broadcast %cst_50 : f32 to vector<16x32xf32>
    %187 = arith.addf %186, %185 : vector<16x32xf32>
    %188 = arith.divf %186, %187 : vector<16x32xf32>
    %189 = vector.extract_strided_slice %176 {offsets = [0, 64], sizes = [16, 32], strides = [1, 1]} : vector<16x128xf32> to vector<16x32xf32>
    %190 = vector.extract_strided_slice %176 {offsets = [0, 96], sizes = [16, 32], strides = [1, 1]} : vector<16x128xf32> to vector<16x32xf32>
    %191 = arith.mulf %182, %190 : vector<16x32xf32>
    %192 = arith.addf %189, %191 : vector<16x32xf32>
    %193 = math.tanh %192 : vector<16x32xf32>
    %cst_51 = arith.constant 1.000000e+00 : f32
    %194 = vector.broadcast %cst_51 : f32 to vector<16x32xf32>
    %195 = arith.subf %194, %188 : vector<16x32xf32>
    %196 = arith.mulf %195, %193 : vector<16x32xf32>
    %197 = arith.mulf %188, %169 : vector<16x32xf32>
    %198 = arith.addf %196, %197 : vector<16x32xf32>
    %cst_52 = arith.constant 0.000000e+00 : f32
    %199 = vector.broadcast %cst_52 : f32 to vector<16x32xf32>
    %200 = arith.maximumf %198, %199 : vector<16x32xf32>
    %c6 = arith.constant 6 : index
    %c0_53 = arith.constant 0 : index
    %201 = vector.load %arg4[%c6, %c0_53] : memref<8x128xf32, #tpu.memory_space<vmem>>, vector<1x128xf32>
    %202 = vector.shape_cast %201 : vector<1x128xf32> to vector<1x128xf32>
    %203 = vector.broadcast %202 : vector<1x128xf32> to vector<16x128xf32>
    %c384 = arith.constant 384 : index
    %c0_54 = arith.constant 0 : index
    %204 = vector.load %arg3[%c384, %c0_54] : memref<704x128xbf16, #tpu.memory_space<vmem>>, vector<64x128xbf16>
    %205 = arith.truncf %200 : vector<16x32xf32> to vector<16x32xbf16>
    %cst_55 = arith.constant dense<0.000000e+00> : vector<16x32xf32>
    %206 = tpu.matmul %1, %205, %cst_55 {dimension_numbers = #tpu.dot_dimension_numbers<[1], [0], [0], [1], [0, 0, 1, 1], [], []>} : vector<16x16xbf16>, vector<16x32xbf16>, vector<16x32xf32> -> vector<16x32xf32>
    %207 = tpu.concatenate %206, %200 in 1 : vector<16x32xf32>, vector<16x32xf32> -> vector<16x64xf32>
    %208 = arith.truncf %207 : vector<16x64xf32> to vector<16x64xbf16>
    %cst_56 = arith.constant dense<0.000000e+00> : vector<16x128xf32>
    %209 = tpu.matmul %208, %204, %cst_56 {dimension_numbers = #tpu.dot_dimension_numbers<[1], [0], [0], [1], [0, 0, 1, 1], [], []>} : vector<16x64xbf16>, vector<64x128xbf16>, vector<16x128xf32> -> vector<16x128xf32>
    %210 = arith.addf %209, %203 : vector<16x128xf32>
    %211 = vector.extract_strided_slice %210 {offsets = [0, 0], sizes = [16, 32], strides = [1, 1]} : vector<16x128xf32> to vector<16x32xf32>
    %212 = arith.negf %211 : vector<16x32xf32>
    %213 = math.exp %212 : vector<16x32xf32>
    %cst_57 = arith.constant 1.000000e+00 : f32
    %214 = vector.broadcast %cst_57 : f32 to vector<16x32xf32>
    %215 = arith.addf %214, %213 : vector<16x32xf32>
    %216 = arith.divf %214, %215 : vector<16x32xf32>
    %217 = vector.extract_strided_slice %210 {offsets = [0, 32], sizes = [16, 32], strides = [1, 1]} : vector<16x128xf32> to vector<16x32xf32>
    %218 = arith.negf %217 : vector<16x32xf32>
    %219 = math.exp %218 : vector<16x32xf32>
    %cst_58 = arith.constant 1.000000e+00 : f32
    %220 = vector.broadcast %cst_58 : f32 to vector<16x32xf32>
    %221 = arith.addf %220, %219 : vector<16x32xf32>
    %222 = arith.divf %220, %221 : vector<16x32xf32>
    %223 = vector.extract_strided_slice %210 {offsets = [0, 64], sizes = [16, 32], strides = [1, 1]} : vector<16x128xf32> to vector<16x32xf32>
    %224 = vector.extract_strided_slice %210 {offsets = [0, 96], sizes = [16, 32], strides = [1, 1]} : vector<16x128xf32> to vector<16x32xf32>
    %225 = arith.mulf %216, %224 : vector<16x32xf32>
    %226 = arith.addf %223, %225 : vector<16x32xf32>
    %227 = math.tanh %226 : vector<16x32xf32>
    %cst_59 = arith.constant 1.000000e+00 : f32
    %228 = vector.broadcast %cst_59 : f32 to vector<16x32xf32>
    %229 = arith.subf %228, %222 : vector<16x32xf32>
    %230 = arith.mulf %229, %227 : vector<16x32xf32>
    %231 = arith.mulf %222, %200 : vector<16x32xf32>
    %232 = arith.addf %230, %231 : vector<16x32xf32>
    %c448 = arith.constant 448 : index
    %c0_60 = arith.constant 0 : index
    %233 = vector.load %arg3[%c448, %c0_60] : memref<704x128xbf16, #tpu.memory_space<vmem>>, vector<64x128xbf16>
    %234 = arith.truncf %232 : vector<16x32xf32> to vector<16x32xbf16>
    %cst_61 = arith.constant dense<0.000000e+00> : vector<16x32xf32>
    %235 = tpu.matmul %1, %234, %cst_61 {dimension_numbers = #tpu.dot_dimension_numbers<[1], [0], [0], [1], [0, 0, 1, 1], [], []>} : vector<16x16xbf16>, vector<16x32xbf16>, vector<16x32xf32> -> vector<16x32xf32>
    %236 = tpu.concatenate %235, %232 in 1 : vector<16x32xf32>, vector<16x32xf32> -> vector<16x64xf32>
    %237 = arith.truncf %236 : vector<16x64xf32> to vector<16x64xbf16>
    %cst_62 = arith.constant dense<0.000000e+00> : vector<16x128xf32>
    %238 = tpu.matmul %237, %233, %cst_62 {dimension_numbers = #tpu.dot_dimension_numbers<[1], [0], [0], [1], [0, 0, 1, 1], [], []>} : vector<16x64xbf16>, vector<64x128xbf16>, vector<16x128xf32> -> vector<16x128xf32>
    %239 = arith.addf %238, %203 : vector<16x128xf32>
    %240 = vector.extract_strided_slice %239 {offsets = [0, 0], sizes = [16, 32], strides = [1, 1]} : vector<16x128xf32> to vector<16x32xf32>
    %241 = arith.negf %240 : vector<16x32xf32>
    %242 = math.exp %241 : vector<16x32xf32>
    %cst_63 = arith.constant 1.000000e+00 : f32
    %243 = vector.broadcast %cst_63 : f32 to vector<16x32xf32>
    %244 = arith.addf %243, %242 : vector<16x32xf32>
    %245 = arith.divf %243, %244 : vector<16x32xf32>
    %246 = vector.extract_strided_slice %239 {offsets = [0, 32], sizes = [16, 32], strides = [1, 1]} : vector<16x128xf32> to vector<16x32xf32>
    %247 = arith.negf %246 : vector<16x32xf32>
    %248 = math.exp %247 : vector<16x32xf32>
    %cst_64 = arith.constant 1.000000e+00 : f32
    %249 = vector.broadcast %cst_64 : f32 to vector<16x32xf32>
    %250 = arith.addf %249, %248 : vector<16x32xf32>
    %251 = arith.divf %249, %250 : vector<16x32xf32>
    %252 = vector.extract_strided_slice %239 {offsets = [0, 64], sizes = [16, 32], strides = [1, 1]} : vector<16x128xf32> to vector<16x32xf32>
    %253 = vector.extract_strided_slice %239 {offsets = [0, 96], sizes = [16, 32], strides = [1, 1]} : vector<16x128xf32> to vector<16x32xf32>
    %254 = arith.mulf %245, %253 : vector<16x32xf32>
    %255 = arith.addf %252, %254 : vector<16x32xf32>
    %256 = math.tanh %255 : vector<16x32xf32>
    %cst_65 = arith.constant 1.000000e+00 : f32
    %257 = vector.broadcast %cst_65 : f32 to vector<16x32xf32>
    %258 = arith.subf %257, %251 : vector<16x32xf32>
    %259 = arith.mulf %258, %256 : vector<16x32xf32>
    %260 = arith.mulf %251, %232 : vector<16x32xf32>
    %261 = arith.addf %259, %260 : vector<16x32xf32>
    %c512 = arith.constant 512 : index
    %c0_66 = arith.constant 0 : index
    %262 = vector.load %arg3[%c512, %c0_66] : memref<704x128xbf16, #tpu.memory_space<vmem>>, vector<64x128xbf16>
    %263 = arith.truncf %261 : vector<16x32xf32> to vector<16x32xbf16>
    %cst_67 = arith.constant dense<0.000000e+00> : vector<16x32xf32>
    %264 = tpu.matmul %1, %263, %cst_67 {dimension_numbers = #tpu.dot_dimension_numbers<[1], [0], [0], [1], [0, 0, 1, 1], [], []>} : vector<16x16xbf16>, vector<16x32xbf16>, vector<16x32xf32> -> vector<16x32xf32>
    %265 = tpu.concatenate %264, %261 in 1 : vector<16x32xf32>, vector<16x32xf32> -> vector<16x64xf32>
    %266 = arith.truncf %265 : vector<16x64xf32> to vector<16x64xbf16>
    %cst_68 = arith.constant dense<0.000000e+00> : vector<16x128xf32>
    %267 = tpu.matmul %266, %262, %cst_68 {dimension_numbers = #tpu.dot_dimension_numbers<[1], [0], [0], [1], [0, 0, 1, 1], [], []>} : vector<16x64xbf16>, vector<64x128xbf16>, vector<16x128xf32> -> vector<16x128xf32>
    %268 = arith.addf %267, %203 : vector<16x128xf32>
    %269 = vector.extract_strided_slice %268 {offsets = [0, 0], sizes = [16, 32], strides = [1, 1]} : vector<16x128xf32> to vector<16x32xf32>
    %270 = arith.negf %269 : vector<16x32xf32>
    %271 = math.exp %270 : vector<16x32xf32>
    %cst_69 = arith.constant 1.000000e+00 : f32
    %272 = vector.broadcast %cst_69 : f32 to vector<16x32xf32>
    %273 = arith.addf %272, %271 : vector<16x32xf32>
    %274 = arith.divf %272, %273 : vector<16x32xf32>
    %275 = vector.extract_strided_slice %268 {offsets = [0, 32], sizes = [16, 32], strides = [1, 1]} : vector<16x128xf32> to vector<16x32xf32>
    %276 = arith.negf %275 : vector<16x32xf32>
    %277 = math.exp %276 : vector<16x32xf32>
    %cst_70 = arith.constant 1.000000e+00 : f32
    %278 = vector.broadcast %cst_70 : f32 to vector<16x32xf32>
    %279 = arith.addf %278, %277 : vector<16x32xf32>
    %280 = arith.divf %278, %279 : vector<16x32xf32>
    %281 = vector.extract_strided_slice %268 {offsets = [0, 64], sizes = [16, 32], strides = [1, 1]} : vector<16x128xf32> to vector<16x32xf32>
    %282 = vector.extract_strided_slice %268 {offsets = [0, 96], sizes = [16, 32], strides = [1, 1]} : vector<16x128xf32> to vector<16x32xf32>
    %283 = arith.mulf %274, %282 : vector<16x32xf32>
    %284 = arith.addf %281, %283 : vector<16x32xf32>
    %285 = math.tanh %284 : vector<16x32xf32>
    %cst_71 = arith.constant 1.000000e+00 : f32
    %286 = vector.broadcast %cst_71 : f32 to vector<16x32xf32>
    %287 = arith.subf %286, %280 : vector<16x32xf32>
    %288 = arith.mulf %287, %285 : vector<16x32xf32>
    %289 = arith.mulf %280, %261 : vector<16x32xf32>
    %290 = arith.addf %288, %289 : vector<16x32xf32>
    %cst_72 = arith.constant 0.000000e+00 : f32
    %291 = vector.broadcast %cst_72 : f32 to vector<16x32xf32>
    %292 = arith.maximumf %290, %291 : vector<16x32xf32>
    %c640 = arith.constant 640 : index
    %c0_73 = arith.constant 0 : index
    %293 = vector.load %arg3[%c640, %c0_73] : memref<704x128xbf16, #tpu.memory_space<vmem>>, vector<32x16xbf16>
    %294 = arith.truncf %292 : vector<16x32xf32> to vector<16x32xbf16>
    %cst_74 = arith.constant dense<0.000000e+00> : vector<16x16xf32>
    %295 = tpu.matmul %294, %293, %cst_74 {dimension_numbers = #tpu.dot_dimension_numbers<[1], [0], [0], [1], [0, 0, 1, 1], [], []>} : vector<16x32xbf16>, vector<32x16xbf16>, vector<16x16xf32> -> vector<16x16xf32>
    %c2 = arith.constant 2 : index
    %c0_75 = arith.constant 0 : index
    %296 = vector.load %arg4[%c2, %c0_75] : memref<8x128xf32, #tpu.memory_space<vmem>>, vector<1x16xf32>
    %297 = vector.broadcast %296 : vector<1x16xf32> to vector<16x16xf32>
    %298 = arith.addf %295, %297 : vector<16x16xf32>
    %cst_76 = arith.constant 0.000000e+00 : f32
    %299 = vector.broadcast %cst_76 : f32 to vector<16x16xf32>
    %300 = arith.maximumf %298, %299 : vector<16x16xf32>
    %c672 = arith.constant 672 : index
    %c0_77 = arith.constant 0 : index
    %301 = vector.load %arg3[%c672, %c0_77] : memref<704x128xbf16, #tpu.memory_space<vmem>>, vector<16x8xbf16>
    %302 = arith.truncf %300 : vector<16x16xf32> to vector<16x16xbf16>
    %cst_78 = arith.constant dense<0.000000e+00> : vector<16x8xf32>
    %303 = tpu.matmul %302, %301, %cst_78 {dimension_numbers = #tpu.dot_dimension_numbers<[1], [0], [0], [1], [0, 0, 1, 1], [], []>} : vector<16x16xbf16>, vector<16x8xbf16>, vector<16x8xf32> -> vector<16x8xf32>
    %c3 = arith.constant 3 : index
    %c0_79 = arith.constant 0 : index
    %304 = vector.load %arg4[%c3, %c0_79] : memref<8x128xf32, #tpu.memory_space<vmem>>, vector<1x8xf32>
    %305 = vector.broadcast %304 : vector<1x8xf32> to vector<16x8xf32>
    %306 = arith.addf %303, %305 : vector<16x8xf32>
    %307 = arith.truncf %306 : vector<16x8xf32> to vector<16x8xbf16>
    %cst_80 = arith.constant dense<0.000000e+00> : vector<2x8xf32>
    %308 = tpu.matmul %2, %307, %cst_80 {dimension_numbers = #tpu.dot_dimension_numbers<[1], [0], [0], [1], [0, 0, 1, 1], [], []>} : vector<2x16xbf16>, vector<16x8xbf16>, vector<2x8xf32> -> vector<2x8xf32>
    %c0_81 = arith.constant 0 : index
    %c0_82 = arith.constant 0 : index
    %309 = vector.load %arg5[%c0_81, %c0_82] : memref<2x8xf32, #tpu.memory_space<vmem>>, vector<2x8xf32>
    tpu.vector_store %arg5[%c0_81, %c0_82], %308 {strides = array<i32>} : memref<2x8xf32, #tpu.memory_space<vmem>>, vector<2x8xf32>,
    return
  }
}

</mosaic_0001>

<bundles_post_ra>
// kernel: tpu_custom_call.1
= control target key start
LH: loop header
LB: loop body
LE: loop exit
PB: predicated region body
PF: predicated region fallthrough
CT: control target
= control target key end

     0   :  { %10 = vsyncpa [#allocation3], 0  ;;  %s2954_s0 = inlined_call_operand.vmem [shape: f32[16,8], index: 0, kind: input, shape index: {}]   ;;  %s2955_s1 = inlined_call_operand.vmem [shape: bf16[16,16], index: 1, kind: input, shape index: {}]   ;;  %s2956_s2 = inlined_call_operand.vmem [shape: bf16[2,16], index: 2, kind: input, shape index: {}]   ;;  %s2957_s3 = inlined_call_operand.hbm [shape: bf16[704,128], index: 3, kind: input, shape index: {}]   ;;  %s2958_s4 = inlined_call_operand.vmem [shape: f32[8,128], index: 4, kind: input, shape index: {}]   ;;  %s2959_s5 = inlined_call_operand.hbm [shape: f32[2,8], index: 5, kind: output, shape index: {}]  }
   0x1   :  { %11 = vsyncpa [#allocation4], 0  ;;  %s2534_s18 = smov [#allocation2]   ;;  %s2486_s22 = scalar_lea.hbm %s2957_s3, 5632 }
   0x2   :  { %s23_s19 = sshll.u32 %s2534_s18, 4  ;;  %p2487_p0 = scmp.ne.s32.totalorder %s2957_s3, %s2486_s22  ;;  %s24_s19 = int_to_ptr.vmem [resolvable:$true] %s23_s19 }
   0x3   :  { %p2490_p1 = scmp.lt.u32.totalorder %s2486_s22, %s2957_s3 }
   0x5   :  { %p2492_p2 = pnand %p2490_p1, %p2487_p0 }
   0x7   :  { %2495 = shalt.err (!%p2492_p2)
}
   0x8   :  { %s2496_s27 = scalar_lea.vmem %s24_s19, 5632  ;;  %p2501_p4 = scmp.lt.s32.totalorder %s24_s19, %s24_s19 }
   0x9   :  { %p2497_p3 = scmp.ne.s32.totalorder %s24_s19, %s2496_s27  ;;  %p2502_p5 = scmp.lt.s32.totalorder %s2496_s27, %s2496_s27 }
   0xb   :  { %p2503_p6 = por %p2502_p5, %p2501_p4 }
   0xd   :  { %p2504_p7 = pnand %p2503_p6, %p2497_p3 }
   0xf   :  { %2507 = shalt.err (!%p2504_p7)
}
  0x10   :  { %s2535_s28 = smov 64   ;;  %s2536_s29 = smov 4  }
  0x11   :  { %29 = dma.hbm_to_vmem [thread:$0]  %s2957_s3, 5632, %s24_s19, [#allocation3], %s2535_s28, %s2535_s28, %s2536_s29  }
  0x12   :  { %2530 = dma.done.wait [#allocation3], 5632  }
  0x13   :  { %2531 = vsyncadd [#allocation3], 4294961664  ;;  %v2537_v0 = vmov 0.0   ;;  %vm2538_vm0 = vmmov 0   ;;  %vm52_vm1 = vcmask 1043456   ;;  %v36_v2 = vld [vmem:[%s2954_s0] sm:$0xff] }
  0x14   :  { %2131 = vmatprep.subr.bf16.mxu0 %v2537_v0  ;;  %2133 = vmatprep.mubr.msk.bf16.mxu0 %vm2538_vm0, %v2537_v0  ;;  %v41_v1 = vld [vmem:[#allocation2 + $0x120] sm:$0xf]  ;;  %v37_v3 = vld [vmem:[%s2954_s0 + $0x8] sm:$0xff]  ;;  %vm48_vm2 = vcmask 64512   ;;  %v2335_v6 = vld [vmem:[#allocation2 + $0x130] sm:$0xff]   ;;  %vm121_vm3 = vcmask 261120  }
  0x15   :  { %2137 = vmatprep.subr.bf16.mxu1 %v2537_v0  ;;  %2141 = vmatprep.mubr.msk.bf16.mxu1 %vm2538_vm0, %v2537_v0  ;;  %v54_v4 = vsel %vm52_vm1, %v41_v1, 0  ;;  %v42_v5 = vpack.c.bf16 %v37_v3, %v36_v2  ;;  %v2336_v7 = vld [vmem:[#allocation2 + $0x138] sm:$0xff]   ;;  %v1966_v8 = vld [vmem:[%s2958_s4] ss:$0 sm:$0xff]  ;;  %v2339_v19 = vld [vmem:[#allocation2 + $0x8] sm:$0xff]   ;;  %s2539_s13 = smov 32  }
  0x16   :  { %2132 = vmatpush3.bf16.msra.mxu0 %v54_v4  ;;  %2138 = vmatpush3.bf16.msra.mxu1 %v2335_v6  ;;  %v2338_v18 = vld [vmem:[#allocation2] sm:$0xff]   ;;  %v2340_v21 = vld [vmem:[#allocation2 + $0x10] sm:$0xff]   ;;  %vm185_vm4 = vcmask 130048   ;;  %v2341_v30 = vld [vmem:[#allocation2 + $0x18] sm:$0xff]   ;;  %vm265_vm5 = vcmask 523264   ;;  %s2540_s18 = smov 96  }
  0x17   :  { %2145 = vmatprep.subr.bf16.mxu0 %v2537_v0  ;;  %2139 = vmatprep.subr.bf16.mxu1 %v2537_v0  ;;  %v1968_v20 = vld [vmem:[%s2958_s4 + $0x1] ss:$0 sm:$0xff]  ;;  %v2636_v40 = vld [vmem:[%s2958_s4 + $0x4] ss:$0 sm:$0xff]  ;;  %s2541_s30 = smov [#allocation5]   ;;  %vm1949_vm6 = vcmask 58368  }
  0x18   :  { %v2619_v29 = vld [vmem:[%s2955_s1] sm:$0xff]   ;;  %s1957_s6 = sshll.u32 %s2541_s30, 4  ;;  %s1958_s6 = int_to_ptr.vmem [resolvable:$true] %s1957_s6 }
  0x19   :  { %2134 = vmatmul.mubr.msk.bf16.vlgmr.msra.gmra.mrb[0].mxu0 %vm48_vm2, %v42_v5  ;;  %p2513_p9 = scmp.lt.s32.totalorder %s1958_s6, %s1958_s6 }
  0x1a   :  { %2147 = vmatprep.mubr.msk.bf16.mxu0 %vm2538_vm0, %v2537_v0  ;;  %2140 = vmatpush3.bf16.msra.mxu1 %v2336_v7 }
  0x1b   :  { %2151 = vmatprep.subr.bf16.mxu1 %v2537_v0 }
  0xec   :  { %v90_v9 = vpop.f32.mrb[0].mxu0 }
  0xed   :  { %v91_v10 = vadd.f32 %v1966_v8, %v90_v9  ;;  %v2135_v11 = vpop.f32.mrb[1].mxu0 }
  0xee   :  { %v93_v12 = vpop.f32.mrb[2].mxu0 }
  0xef   :  { %v94_v13 = vadd.f32 %v1966_v8, %v93_v12  ;;  %v2136_v14 = vpop.f32.mrb[3].mxu0  ;;  %v97_v15 = vmax.f32 %v91_v10, 0.0 }
  0xf0   :  { %v2342_v14 = vld [vmem:[#allocation2 + $0x20] sm:$0xff]  }
  0xf1   :  { %v98_v16 = vmax.f32 %v94_v13, 0.0 }
  0xf3   :  { %v103_v17 = vpack.c.bf16 %v98_v16, %v97_v15  ;;  %v2343_v15 = vld [vmem:[#allocation2 + $0x28] sm:$0xff]   ;;  %v2344_v16 = vld [vmem:[#allocation2 + $0x30] sm:$0xff]  }
  0xf5   :  { %2142 = vmatmul.mubr.msk.bf16.vlgmr.msra.gmra.mrb[0].mxu1 %vm121_vm3, %v103_v17  ;;  %v2345_v17 = vld [vmem:[#allocation2 + $0x38] sm:$0xff]  }
  0xf6   :  { %2159 = vmatprep.mubr.msk.bf16.mxu1 %vm2538_vm0, %v2537_v0  ;;  %2152 = vmatpush3.bf16.msra.mxu1 %v2338_v18 }
  0xf7   :  { %2153 = vmatprep.subr.bf16.mxu1 %v2537_v0 }
  0xfa   :  { %2154 = vmatpush3.bf16.msra.mxu1 %v2339_v19 }
  0xfb   :  { %2155 = vmatprep.subr.bf16.mxu1 %v2537_v0 }
  0xfe   :  { %2156 = vmatpush3.bf16.msra.mxu1 %v2340_v21 }
  0xff   :  { %2157 = vmatprep.subr.bf16.mxu1 %v2537_v0 }
 0x102   :  { %2158 = vmatpush3.bf16.msra.mxu1 %v2341_v30 }
 0x103   :  { %2181 = vmatprep.subr.bf16.mxu1 %v2537_v0 }
 0x1c8   :  { %v159_v22 = vpop.f32.mrb[0].mxu1 }
 0x1c9   :  { %v160_v23 = vadd.f32 %v1968_v20, %v159_v22  ;;  %v2143_v24 = vpop.f32.mrb[1].mxu1 }
 0x1ca   :  { %v162_v25 = vpop.f32.mrb[2].mxu1 }
 0x1cb   :  { %v163_v26 = vadd.f32 %v1968_v20, %v162_v25  ;;  %232 = vrot.lane.b32.xlu0 %v160_v23, %s2539_s13  ;;  %v2144_v27 = vpop.f32.mrb[3].mxu1 }
 0x1cd   :  { %v179_v28 = vpack.c.bf16 %v163_v26, %v160_v23 }
 0x1cf   :  { %234 = vrot.lane.b32.xlu0 %v163_v26, %s2539_s13  ;;  %2146 = vmatpush3.bf16.msra.mxu0 %v179_v28 }
 0x1d0   :  { %2163 = vmatprep.subr.bf16.mxu0 %v2537_v0 }
 0x1d2   :  { %2148 = vmatmul.mubr.msk.bf16.vlgmr.msra.gmra.mrb[4].mxu0 %vm185_vm4, %v2619_v29 }
 0x1d3   :  { %2165 = vmatprep.mubr.msk.bf16.mxu0 %vm2538_vm0, %v2537_v0 }
 0x23d   :  { %v233_v31 = vpop.permute.xlu0 %232 }
 0x241   :  { %v235_v34 = vpop.permute.xlu0 %234 }
 0x2a5   :  { %v223_v32 = vpop.f32.mrb[4].mxu0 }
 0x2a6   :  { %v2149_v33 = vpop.f32.mrb[5].mxu0  ;;  %v238_v36 = vsel %vm121_vm3, %v223_v32, %v233_v31 }
 0x2a7   :  { %v226_v35 = vpop.f32.mrb[6].mxu0 }
 0x2a8   :  { %v239_v37 = vsel %vm121_vm3, %v226_v35, %v235_v34  ;;  %v2150_v38 = vpop.f32.mrb[7].mxu0 }
 0x2a9   :  { %v240_v39 = vpack.c.bf16 %v239_v37, %v238_v36 }
 0x2ab   :  { %2160 = vmatmul.mubr.msk.bf16.vlgmr.msra.gmra.mrb[4].mxu1 %vm265_vm5, %v240_v39 }
 0x2ac   :  { %2183 = vmatprep.mubr.msk.bf16.mxu1 %vm2538_vm0, %v2537_v0 }
 0x37e   :  { %v303_v41 = vpop.f32.mrb[4].mxu1 }
 0x37f   :  { %v304_v42 = vadd.f32 %v2636_v40, %v303_v41  ;;  %v2161_v43 = vpop.f32.mrb[5].mxu1 }
 0x380   :  { %v306_v44 = vpop.f32.mrb[6].mxu1 }
 0x381   :  { %324 = vrot.lane.b32.xlu1 %v304_v42, %s2539_s13  ;;  %v2162_v45 = vpop.f32.mrb[7].mxu1  ;;  %v307_v46 = vadd.f32 %v2636_v40, %v306_v44  ;;  %v1980_v47 = vmul.f32 -1.442695, %v304_v42 }
 0x383   :  { %2377 = vpow2.f32 %v1980_v47  ;;  %v1981_v48 = vmul.f32 -1.442695, %v307_v46 }
 0x385   :  { %326 = vrot.lane.b32.xlu1 %v307_v46, %s2539_s13  ;;  %2379 = vpow2.f32 %v1981_v48 }
 0x38d   :  { %v2378_v49 = vpop.eup %2377 }
 0x38e   :  { %v316_v50 = vadd.f32 1.0, %v2378_v49 }
 0x38f   :  { %v2380_v51 = vpop.eup %2379 }
 0x390   :  { %2381 = vrcp.f32 %v316_v50  ;;  %v317_v52 = vadd.f32 1.0, %v2380_v51 }
 0x392   :  { %2383 = vrcp.f32 %v317_v52 }
 0x39a   :  { %v2382_v53 = vpop.eup %2381 }
 0x39b   :  { %v344_v3 = vsub.f32 1.0, %v2382_v53  ;;  %v356_v7 = vmul.f32 %v2382_v53, %v233_v31 }
 0x39c   :  { %v2384_v56 = vpop.eup %2383 }
 0x39d   :  { %v345_v5 = vsub.f32 1.0, %v2384_v56  ;;  %v357_v8 = vmul.f32 %v2384_v56, %v235_v34 }
 0x3f3   :  { %v325_v54 = vpop.permute.xlu1 %324 }
 0x3f4   :  { %v330_v55 = vmul.f32 %v2382_v53, %v325_v54 }
 0x3f6   :  { %334 = vrot.lane.b32.xlu0 %v330_v55, %s2535_s28 }
 0x3f7   :  { %v327_v57 = vpop.permute.xlu1 %326 }
 0x3f8   :  { %v331_v58 = vmul.f32 %v2384_v56, %v327_v57 }
 0x3fa   :  { %336 = vrot.lane.b32.xlu1 %v331_v58, %s2535_s28 }
 0x468   :  { %v335_v59 = vpop.permute.xlu0 %334 }
 0x469   :  { %v340_v60 = vadd.f32 %v335_v59, %v304_v42 }
 0x46b   :  { %2385 = vtanh.f32 %v340_v60 }
 0x46c   :  { %v337_v61 = vpop.permute.xlu1 %336 }
 0x46d   :  { %v341_v62 = vadd.f32 %v337_v61, %v307_v46 }
 0x46f   :  { %2387 = vtanh.f32 %v341_v62 }
 0x475   :  { %v2386_v63 = vpop.eup %2385 }
 0x476   :  { %348 = vrot.lane.b32.xlu0 %v2386_v63, %s2540_s18  ;;  %v2346_v63 = vld [vmem:[#allocation2 + $0x40] sm:$0xff]  }
 0x479   :  { %v2388_v1 = vpop.eup %2387 }
 0x47a   :  { %350 = vrot.lane.b32.xlu1 %v2388_v1, %s2540_s18  ;;  %v2347_v1 = vld [vmem:[#allocation2 + $0x48] sm:$0xff]  }
 0x4e8   :  { %v349_v2 = vpop.permute.xlu0 %348 }
 0x4e9   :  { %v354_v4 = vmul.f32 %v349_v2, %v344_v3  ;;  %v2348_v2 = vld [vmem:[#allocation2 + $0x50] sm:$0xff]   ;;  %v2349_v3 = vld [vmem:[#allocation2 + $0x58] sm:$0xff]  }
 0x4eb   :  { %v2646_v10 = vadd.f32 %v356_v7, %v354_v4 }
 0x4ec   :  { %v351_v6 = vpop.permute.xlu1 %350 }
 0x4ed   :  { %v355_v9 = vmul.f32 %v351_v6, %v345_v5 }
 0x4ef   :  { %v2648_v11 = vadd.f32 %v357_v8, %v355_v9 }
 0x4f1   :  { %v368_v12 = vpack.c.bf16 %v2648_v11, %v2646_v10 }
 0x4f3   :  { %370 = vrot.lane.b32.xlu0 %v368_v12, %s2540_s18 }
 0x565   :  { %v371_v13 = vpop.permute.xlu0 %370 }
 0x566   :  { %2164 = vmatpush3.bf16.msra.mxu0 %v371_v13 }
 0x567   :  { %2169 = vmatprep.subr.bf16.mxu0 %v2537_v0 }
 0x569   :  { %2166 = vmatmul.mubr.msk.bf16.vlgmr.msra.gmra.mrb[8].mxu0 %vm185_vm4, %v2619_v29 }
 0x56a   :  { %2170 = vmatpush3.bf16.msra.mxu0 %v2342_v14  ;;  %2177 = vmatprep.mubr.msk.bf16.mxu0 %vm2538_vm0, %v2537_v0 }
 0x56b   :  { %2171 = vmatprep.subr.bf16.mxu0 %v2537_v0 }
 0x56e   :  { %2172 = vmatpush3.bf16.msra.mxu0 %v2343_v15 }
 0x56f   :  { %2173 = vmatprep.subr.bf16.mxu0 %v2537_v0 }
 0x572   :  { %2174 = vmatpush3.bf16.msra.mxu0 %v2344_v16 }
 0x573   :  { %2175 = vmatprep.subr.bf16.mxu0 %v2537_v0 }
 0x576   :  { %2176 = vmatpush3.bf16.msra.mxu0 %v2345_v17 }
 0x577   :  { %2199 = vmatprep.subr.bf16.mxu0 %v2537_v0 }
 0x63c   :  { %v407_v18 = vpop.f32.mrb[8].mxu0 }
 0x63d   :  { %v2167_v19 = vpop.f32.mrb[9].mxu0  ;;  %v414_v21 = vsel %vm121_vm3, %v407_v18, %v2646_v10 }
 0x63e   :  { %v410_v20 = vpop.f32.mrb[10].mxu0 }
 0x63f   :  { %v415_v22 = vsel %vm121_vm3, %v410_v20, %v2648_v11  ;;  %v2168_v23 = vpop.f32.mrb[11].mxu0 }
 0x640   :  { %v416_v24 = vpack.c.bf16 %v415_v22, %v414_v21 }
 0x642   :  { %2178 = vmatmul.mubr.msk.bf16.vlgmr.msra.gmra.mrb[12].mxu0 %vm265_vm5, %v416_v24 }
 0x643   :  { %2201 = vmatprep.mubr.msk.bf16.mxu0 %vm2538_vm0, %v2537_v0 }
 0x715   :  { %v478_v25 = vpop.f32.mrb[12].mxu0 }
 0x716   :  { %v479_v26 = vadd.f32 %v2636_v40, %v478_v25  ;;  %v2179_v27 = vpop.f32.mrb[13].mxu0 }
 0x717   :  { %v481_v28 = vpop.f32.mrb[14].mxu0 }
 0x718   :  { %v482_v30 = vadd.f32 %v2636_v40, %v481_v28  ;;  %499 = vrot.lane.b32.xlu1 %v479_v26, %s2539_s13  ;;  %v2180_v31 = vpop.f32.mrb[15].mxu0  ;;  %v1988_v32 = vmul.f32 -1.442695, %v479_v26 }
 0x71a   :  { %501 = vrot.lane.b32.xlu0 %v482_v30, %s2539_s13  ;;  %v1989_v33 = vmul.f32 -1.442695, %v482_v30  ;;  %2389 = vpow2.f32 %v1988_v32 }
 0x71c   :  { %2391 = vpow2.f32 %v1989_v33 }
 0x724   :  { %v2390_v34 = vpop.eup %2389 }
 0x725   :  { %v491_v36 = vadd.f32 1.0, %v2390_v34 }
 0x726   :  { %v2392_v35 = vpop.eup %2391 }
 0x727   :  { %v492_v37 = vadd.f32 1.0, %v2392_v35  ;;  %2393 = vrcp.f32 %v491_v36 }
 0x729   :  { %2395 = vrcp.f32 %v492_v37 }
 0x731   :  { %v2394_v38 = vpop.eup %2393 }
 0x732   :  { %v519_v51 = vsub.f32 1.0, %v2394_v38  ;;  %v531_v56 = vmul.f32 %v2394_v38, %v2646_v10 }
 0x733   :  { %v2396_v42 = vpop.eup %2395 }
 0x734   :  { %v520_v54 = vsub.f32 1.0, %v2396_v42  ;;  %v532_v57 = vmul.f32 %v2396_v42, %v2648_v11 }
 0x78a   :  { %v500_v39 = vpop.permute.xlu1 %499 }
 0x78b   :  { %v505_v41 = vmul.f32 %v2394_v38, %v500_v39 }
 0x78c   :  { %v502_v43 = vpop.permute.xlu0 %501 }
 0x78d   :  { %v506_v44 = vmul.f32 %v2396_v42, %v502_v43  ;;  %509 = vrot.lane.b32.xlu1 %v505_v41, %s2535_s28 }
 0x78f   :  { %511 = vrot.lane.b32.xlu0 %v506_v44, %s2535_s28 }
 0x7ff   :  { %v510_v45 = vpop.permute.xlu1 %509 }
 0x800   :  { %v515_v46 = vadd.f32 %v510_v45, %v479_v26 }
 0x801   :  { %v512_v47 = vpop.permute.xlu0 %511 }
 0x802   :  { %2397 = vtanh.f32 %v515_v46  ;;  %v516_v48 = vadd.f32 %v512_v47, %v482_v30 }
 0x804   :  { %2399 = vtanh.f32 %v516_v48 }
 0x80c   :  { %v2398_v49 = vpop.eup %2397 }
 0x80d   :  { %523 = vrot.lane.b32.xlu1 %v2398_v49, %s2540_s18 }
 0x80e   :  { %v2400_v50 = vpop.eup %2399 }
 0x80f   :  { %525 = vrot.lane.b32.xlu0 %v2400_v50, %s2540_s18  ;;  %v2350_v50 = vld [vmem:[#allocation2 + $0x60] sm:$0xff]  }
 0x87f   :  { %v524_v52 = vpop.permute.xlu1 %523 }
 0x880   :  { %v529_v53 = vmul.f32 %v524_v52, %v519_v51  ;;  %v2351_v51 = vld [vmem:[#allocation2 + $0x68] sm:$0xff]   ;;  %v2352_v52 = vld [vmem:[#allocation2 + $0x70] sm:$0xff]  }
 0x881   :  { %v526_v55 = vpop.permute.xlu0 %525 }
 0x882   :  { %v530_v58 = vmul.f32 %v526_v55, %v520_v54  ;;  %v2679_v59 = vadd.f32 %v531_v56, %v529_v53  ;;  %v2353_v53 = vld [vmem:[#allocation2 + $0x78] sm:$0xff]  }
 0x884   :  { %v2681_v60 = vadd.f32 %v532_v57, %v530_v58 }
 0x886   :  { %v543_v61 = vpack.c.bf16 %v2681_v60, %v2679_v59 }
 0x888   :  { %545 = vrot.lane.b32.xlu1 %v543_v61, %s2540_s18  ;;  %v2738_v61 = vld [vmem:[%s2958_s4 + $0x5] ss:$0 sm:$0xff] }
 0x8fa   :  { %v546_v62 = vpop.permute.xlu1 %545 }
 0x8fb   :  { %2182 = vmatpush3.bf16.msra.mxu1 %v546_v62 }
 0x8fc   :  { %2187 = vmatprep.subr.bf16.mxu1 %v2537_v0 }
 0x8fe   :  { %2184 = vmatmul.mubr.msk.bf16.vlgmr.msra.gmra.mrb[8].mxu1 %vm185_vm4, %v2619_v29 }
 0x8ff   :  { %2188 = vmatpush3.bf16.msra.mxu1 %v2346_v63  ;;  %2195 = vmatprep.mubr.msk.bf16.mxu1 %vm2538_vm0, %v2537_v0 }
 0x900   :  { %2189 = vmatprep.subr.bf16.mxu1 %v2537_v0 }
 0x903   :  { %2190 = vmatpush3.bf16.msra.mxu1 %v2347_v1 }
 0x904   :  { %2191 = vmatprep.subr.bf16.mxu1 %v2537_v0 }
 0x907   :  { %2192 = vmatpush3.bf16.msra.mxu1 %v2348_v2 }
 0x908   :  { %2193 = vmatprep.subr.bf16.mxu1 %v2537_v0 }
 0x90b   :  { %2194 = vmatpush3.bf16.msra.mxu1 %v2349_v3 }
 0x90c   :  { %2217 = vmatprep.subr.bf16.mxu1 %v2537_v0 }
 0x9d1   :  { %v582_v4 = vpop.f32.mrb[8].mxu1 }
 0x9d2   :  { %v2185_v5 = vpop.f32.mrb[9].mxu1  ;;  %v589_v7 = vsel %vm121_vm3, %v582_v4, %v2679_v59 }
 0x9d3   :  { %v585_v6 = vpop.f32.mrb[10].mxu1 }
 0x9d4   :  { %v590_v8 = vsel %vm121_vm3, %v585_v6, %v2681_v60  ;;  %v2186_v9 = vpop.f32.mrb[11].mxu1 }
 0x9d5   :  { %v591_v10 = vpack.c.bf16 %v590_v8, %v589_v7 }
 0x9d7   :  { %2196 = vmatmul.mubr.msk.bf16.vlgmr.msra.gmra.mrb[12].mxu1 %vm265_vm5, %v591_v10 }
 0x9d8   :  { %2219 = vmatprep.mubr.msk.bf16.mxu1 %vm2538_vm0, %v2537_v0 }
 0xaaa   :  { %v653_v11 = vpop.f32.mrb[12].mxu1 }
 0xaab   :  { %v654_v12 = vadd.f32 %v2636_v40, %v653_v11  ;;  %v2197_v13 = vpop.f32.mrb[13].mxu1 }
 0xaac   :  { %v656_v14 = vpop.f32.mrb[14].mxu1 }
 0xaad   :  { %v657_v15 = vadd.f32 %v2636_v40, %v656_v14  ;;  %674 = vrot.lane.b32.xlu0 %v654_v12, %s2539_s13  ;;  %v2198_v16 = vpop.f32.mrb[15].mxu1  ;;  %v1996_v17 = vmul.f32 -1.442695, %v654_v12 }
 0xaaf   :  { %676 = vrot.lane.b32.xlu1 %v657_v15, %s2539_s13  ;;  %v1997_v18 = vmul.f32 -1.442695, %v657_v15  ;;  %2401 = vpow2.f32 %v1996_v17 }
 0xab1   :  { %2403 = vpow2.f32 %v1997_v18 }
 0xab9   :  { %v2402_v19 = vpop.eup %2401 }
 0xaba   :  { %v666_v21 = vadd.f32 1.0, %v2402_v19 }
 0xabb   :  { %v2404_v20 = vpop.eup %2403 }
 0xabc   :  { %v667_v22 = vadd.f32 1.0, %v2404_v20  ;;  %2405 = vrcp.f32 %v666_v21 }
 0xabe   :  { %2407 = vrcp.f32 %v667_v22 }
 0xac6   :  { %v2406_v23 = vpop.eup %2405 }
 0xac7   :  { %v694_v35 = vsub.f32 1.0, %v2406_v23  ;;  %v706_v37 = vmul.f32 %v2406_v23, %v2679_v59 }
 0xac8   :  { %v2408_v26 = vpop.eup %2407 }
 0xac9   :  { %v695_v39 = vsub.f32 1.0, %v2408_v26  ;;  %v707_v43 = vmul.f32 %v2408_v26, %v2681_v60 }
 0xb1f   :  { %v675_v24 = vpop.permute.xlu0 %674 }
 0xb20   :  { %v680_v25 = vmul.f32 %v2406_v23, %v675_v24 }
 0xb21   :  { %v677_v40 = vpop.permute.xlu1 %676 }
 0xb22   :  { %v681_v27 = vmul.f32 %v2408_v26, %v677_v40  ;;  %684 = vrot.lane.b32.xlu0 %v680_v25, %s2535_s28 }
 0xb24   :  { %686 = vrot.lane.b32.xlu1 %v681_v27, %s2535_s28 }
 0xb94   :  { %v685_v28 = vpop.permute.xlu0 %684 }
 0xb95   :  { %v690_v30 = vadd.f32 %v685_v28, %v654_v12 }
 0xb96   :  { %v687_v31 = vpop.permute.xlu1 %686 }
 0xb97   :  { %2409 = vtanh.f32 %v690_v30  ;;  %v691_v32 = vadd.f32 %v687_v31, %v657_v15 }
 0xb99   :  { %2411 = vtanh.f32 %v691_v32 }
 0xba1   :  { %v2410_v33 = vpop.eup %2409 }
 0xba2   :  { %698 = vrot.lane.b32.xlu0 %v2410_v33, %s2540_s18 }
 0xba3   :  { %v2412_v34 = vpop.eup %2411 }
 0xba4   :  { %700 = vrot.lane.b32.xlu1 %v2412_v34, %s2540_s18 }
 0xc14   :  { %v699_v36 = vpop.permute.xlu0 %698 }
 0xc15   :  { %v704_v38 = vmul.f32 %v699_v36, %v694_v35  ;;  %v2354_v35 = vld [vmem:[#allocation2 + $0x80] sm:$0xff]   ;;  %v2355_v36 = vld [vmem:[#allocation2 + $0x88] sm:$0xff]  }
 0xc16   :  { %v701_v41 = vpop.permute.xlu1 %700 }
 0xc17   :  { %v708_v42 = vadd.f32 %v706_v37, %v704_v38  ;;  %v705_v44 = vmul.f32 %v701_v41, %v695_v39  ;;  %v2356_v37 = vld [vmem:[#allocation2 + $0x90] sm:$0xff]   ;;  %v2357_v38 = vld [vmem:[#allocation2 + $0x98] sm:$0xff]  }
 0xc19   :  { %v709_v45 = vadd.f32 %v707_v43, %v705_v44  ;;  %v2712_v46 = vmax.f32 %v708_v42, 0.0 }
 0xc1b   :  { %v2714_v47 = vmax.f32 %v709_v45, 0.0 }
 0xc1d   :  { %v725_v48 = vpack.c.bf16 %v2714_v47, %v2712_v46 }
 0xc1f   :  { %727 = vrot.lane.b32.xlu0 %v725_v48, %s2540_s18 }
 0xc91   :  { %v728_v49 = vpop.permute.xlu0 %727 }
 0xc92   :  { %2200 = vmatpush3.bf16.msra.mxu0 %v728_v49 }
 0xc93   :  { %2205 = vmatprep.subr.bf16.mxu0 %v2537_v0 }
 0xc95   :  { %2202 = vmatmul.mubr.msk.bf16.vlgmr.msra.gmra.mrb[16].mxu0 %vm185_vm4, %v2619_v29 }
 0xc96   :  { %2206 = vmatpush3.bf16.msra.mxu0 %v2350_v50  ;;  %2213 = vmatprep.mubr.msk.bf16.mxu0 %vm2538_vm0, %v2537_v0 }
 0xc97   :  { %2207 = vmatprep.subr.bf16.mxu0 %v2537_v0 }
 0xc9a   :  { %2208 = vmatpush3.bf16.msra.mxu0 %v2351_v51 }
 0xc9b   :  { %2209 = vmatprep.subr.bf16.mxu0 %v2537_v0 }
 0xc9e   :  { %2210 = vmatpush3.bf16.msra.mxu0 %v2352_v52 }
 0xc9f   :  { %2211 = vmatprep.subr.bf16.mxu0 %v2537_v0 }
 0xca2   :  { %2212 = vmatpush3.bf16.msra.mxu0 %v2353_v53 }
 0xca3   :  { %2235 = vmatprep.subr.bf16.mxu0 %v2537_v0 }
 0xd68   :  { %v764_v54 = vpop.f32.mrb[16].mxu0 }
 0xd69   :  { %v2203_v55 = vpop.f32.mrb[17].mxu0  ;;  %v771_v57 = vsel %vm121_vm3, %v764_v54, %v2712_v46 }
 0xd6a   :  { %v767_v56 = vpop.f32.mrb[18].mxu0 }
 0xd6b   :  { %v772_v58 = vsel %vm121_vm3, %v767_v56, %v2714_v47  ;;  %v2204_v59 = vpop.f32.mrb[19].mxu0 }
 0xd6c   :  { %v773_v60 = vpack.c.bf16 %v772_v58, %v771_v57 }
 0xd6e   :  { %2214 = vmatmul.mubr.msk.bf16.vlgmr.msra.gmra.mrb[20].mxu0 %vm265_vm5, %v773_v60 }
 0xd6f   :  { %2237 = vmatprep.mubr.msk.bf16.mxu0 %vm2538_vm0, %v2537_v0 }
 0xe41   :  { %v835_v62 = vpop.f32.mrb[20].mxu0 }
 0xe42   :  { %v836_v63 = vadd.f32 %v2738_v61, %v835_v62  ;;  %v2215_v1 = vpop.f32.mrb[21].mxu0 }
 0xe43   :  { %v838_v2 = vpop.f32.mrb[22].mxu0 }
 0xe44   :  { %v839_v3 = vadd.f32 %v2738_v61, %v838_v2  ;;  %856 = vrot.lane.b32.xlu1 %v836_v63, %s2539_s13  ;;  %v2216_v4 = vpop.f32.mrb[23].mxu0  ;;  %v2005_v5 = vmul.f32 -1.442695, %v836_v63 }
 0xe46   :  { %858 = vrot.lane.b32.xlu0 %v839_v3, %s2539_s13  ;;  %v2006_v6 = vmul.f32 -1.442695, %v839_v3  ;;  %2413 = vpow2.f32 %v2005_v5 }
 0xe48   :  { %2415 = vpow2.f32 %v2006_v6 }
 0xe50   :  { %v2414_v7 = vpop.eup %2413 }
 0xe51   :  { %v848_v9 = vadd.f32 1.0, %v2414_v7 }
 0xe52   :  { %v2416_v8 = vpop.eup %2415 }
 0xe53   :  { %v849_v10 = vadd.f32 1.0, %v2416_v8  ;;  %2417 = vrcp.f32 %v848_v9 }
 0xe55   :  { %2419 = vrcp.f32 %v849_v10 }
 0xe5d   :  { %v2418_v11 = vpop.eup %2417 }
 0xe5e   :  { %v876_v23 = vsub.f32 1.0, %v2418_v11  ;;  %v888_v27 = vmul.f32 %v2418_v11, %v2712_v46 }
 0xe5f   :  { %v2420_v14 = vpop.eup %2419 }
 0xe60   :  { %v877_v26 = vsub.f32 1.0, %v2420_v14  ;;  %v889_v28 = vmul.f32 %v2420_v14, %v2714_v47 }
 0xeb6   :  { %v857_v12 = vpop.permute.xlu1 %856 }
 0xeb7   :  { %v862_v13 = vmul.f32 %v2418_v11, %v857_v12 }
 0xeb8   :  { %v859_v15 = vpop.permute.xlu0 %858 }
 0xeb9   :  { %v863_v16 = vmul.f32 %v2420_v14, %v859_v15  ;;  %866 = vrot.lane.b32.xlu1 %v862_v13, %s2535_s28 }
 0xebb   :  { %868 = vrot.lane.b32.xlu0 %v863_v16, %s2535_s28 }
 0xf2b   :  { %v867_v17 = vpop.permute.xlu1 %866 }
 0xf2c   :  { %v872_v18 = vadd.f32 %v867_v17, %v836_v63 }
 0xf2d   :  { %v869_v19 = vpop.permute.xlu0 %868 }
 0xf2e   :  { %2421 = vtanh.f32 %v872_v18  ;;  %v873_v20 = vadd.f32 %v869_v19, %v839_v3 }
 0xf30   :  { %2423 = vtanh.f32 %v873_v20 }
 0xf38   :  { %v2422_v21 = vpop.eup %2421 }
 0xf39   :  { %880 = vrot.lane.b32.xlu1 %v2422_v21, %s2540_s18  ;;  %v2358_v21 = vld [vmem:[#allocation2 + $0xa0] sm:$0xff]  }
 0xf3a   :  { %v2424_v22 = vpop.eup %2423 }
 0xf3b   :  { %882 = vrot.lane.b32.xlu0 %v2424_v22, %s2540_s18  ;;  %v2359_v22 = vld [vmem:[#allocation2 + $0xa8] sm:$0xff]  }
 0xfab   :  { %v881_v24 = vpop.permute.xlu1 %880 }
 0xfac   :  { %v886_v25 = vmul.f32 %v881_v24, %v876_v23  ;;  %v2360_v23 = vld [vmem:[#allocation2 + $0xb0] sm:$0xff]   ;;  %v2361_v24 = vld [vmem:[#allocation2 + $0xb8] sm:$0xff]  }
 0xfad   :  { %v883_v40 = vpop.permute.xlu0 %882 }
 0xfae   :  { %v887_v30 = vmul.f32 %v883_v40, %v877_v26  ;;  %v2750_v31 = vadd.f32 %v888_v27, %v886_v25 }
 0xfb0   :  { %v2752_v32 = vadd.f32 %v889_v28, %v887_v30 }
 0xfb2   :  { %v900_v33 = vpack.c.bf16 %v2752_v32, %v2750_v31 }
 0xfb4   :  { %902 = vrot.lane.b32.xlu1 %v900_v33, %s2540_s18 }
0x1026   :  { %v903_v34 = vpop.permute.xlu1 %902 }
0x1027   :  { %2218 = vmatpush3.bf16.msra.mxu1 %v903_v34 }
0x1028   :  { %2223 = vmatprep.subr.bf16.mxu1 %v2537_v0 }
0x102a   :  { %2220 = vmatmul.mubr.msk.bf16.vlgmr.msra.gmra.mrb[16].mxu1 %vm185_vm4, %v2619_v29 }
0x102b   :  { %2224 = vmatpush3.bf16.msra.mxu1 %v2354_v35  ;;  %2231 = vmatprep.mubr.msk.bf16.mxu1 %vm2538_vm0, %v2537_v0 }
0x102c   :  { %2225 = vmatprep.subr.bf16.mxu1 %v2537_v0 }
0x102f   :  { %2226 = vmatpush3.bf16.msra.mxu1 %v2355_v36 }
0x1030   :  { %2227 = vmatprep.subr.bf16.mxu1 %v2537_v0 }
0x1033   :  { %2228 = vmatpush3.bf16.msra.mxu1 %v2356_v37 }
0x1034   :  { %2229 = vmatprep.subr.bf16.mxu1 %v2537_v0 }
0x1037   :  { %2230 = vmatpush3.bf16.msra.mxu1 %v2357_v38 }
0x1038   :  { %2253 = vmatprep.subr.bf16.mxu1 %v2537_v0 }
0x10fd   :  { %v939_v39 = vpop.f32.mrb[16].mxu1 }
0x10fe   :  { %v2221_v41 = vpop.f32.mrb[17].mxu1  ;;  %v946_v43 = vsel %vm121_vm3, %v939_v39, %v2750_v31 }
0x10ff   :  { %v942_v42 = vpop.f32.mrb[18].mxu1 }
0x1100   :  { %v947_v44 = vsel %vm121_vm3, %v942_v42, %v2752_v32  ;;  %v2222_v45 = vpop.f32.mrb[19].mxu1 }
0x1101   :  { %v948_v46 = vpack.c.bf16 %v947_v44, %v946_v43 }
0x1103   :  { %2232 = vmatmul.mubr.msk.bf16.vlgmr.msra.gmra.mrb[20].mxu1 %vm265_vm5, %v948_v46 }
0x1104   :  { %2255 = vmatprep.mubr.msk.bf16.mxu1 %vm2538_vm0, %v2537_v0 }
0x11d6   :  { %v1010_v47 = vpop.f32.mrb[20].mxu1 }
0x11d7   :  { %v1011_v48 = vadd.f32 %v2738_v61, %v1010_v47  ;;  %v2233_v49 = vpop.f32.mrb[21].mxu1 }
0x11d8   :  { %v1013_v50 = vpop.f32.mrb[22].mxu1 }
0x11d9   :  { %v1014_v51 = vadd.f32 %v2738_v61, %v1013_v50  ;;  %1031 = vrot.lane.b32.xlu0 %v1011_v48, %s2539_s13  ;;  %v2234_v52 = vpop.f32.mrb[23].mxu1  ;;  %v2013_v53 = vmul.f32 -1.442695, %v1011_v48 }
0x11db   :  { %1033 = vrot.lane.b32.xlu1 %v1014_v51, %s2539_s13  ;;  %v2014_v54 = vmul.f32 -1.442695, %v1014_v51  ;;  %2425 = vpow2.f32 %v2013_v53 }
0x11dd   :  { %2427 = vpow2.f32 %v2014_v54 }
0x11e5   :  { %v2426_v55 = vpop.eup %2425 }
0x11e6   :  { %v1023_v57 = vadd.f32 1.0, %v2426_v55 }
0x11e7   :  { %v2428_v56 = vpop.eup %2427 }
0x11e8   :  { %v1024_v58 = vadd.f32 1.0, %v2428_v56  ;;  %2429 = vrcp.f32 %v1023_v57 }
0x11ea   :  { %2431 = vrcp.f32 %v1024_v58 }
0x11f2   :  { %v2430_v59 = vpop.eup %2429 }
0x11f3   :  { %v1051_v9 = vsub.f32 1.0, %v2430_v59  ;;  %v1063_v14 = vmul.f32 %v2430_v59, %v2750_v31 }
0x11f4   :  { %v2432_v63 = vpop.eup %2431 }
0x11f5   :  { %v1052_v12 = vsub.f32 1.0, %v2432_v63  ;;  %v1064_v15 = vmul.f32 %v2432_v63, %v2752_v32 }
0x124b   :  { %v1032_v60 = vpop.permute.xlu0 %1031 }
0x124c   :  { %v1037_v62 = vmul.f32 %v2430_v59, %v1032_v60 }
0x124d   :  { %v1034_v1 = vpop.permute.xlu1 %1033 }
0x124e   :  { %v1038_v2 = vmul.f32 %v2432_v63, %v1034_v1  ;;  %1041 = vrot.lane.b32.xlu0 %v1037_v62, %s2535_s28 }
0x1250   :  { %1043 = vrot.lane.b32.xlu1 %v1038_v2, %s2535_s28 }
0x12c0   :  { %v1042_v3 = vpop.permute.xlu0 %1041 }
0x12c1   :  { %v1047_v4 = vadd.f32 %v1042_v3, %v1011_v48 }
0x12c2   :  { %v1044_v5 = vpop.permute.xlu1 %1043 }
0x12c3   :  { %2433 = vtanh.f32 %v1047_v4  ;;  %v1048_v6 = vadd.f32 %v1044_v5, %v1014_v51 }
0x12c5   :  { %2435 = vtanh.f32 %v1048_v6 }
0x12cd   :  { %v2434_v7 = vpop.eup %2433 }
0x12ce   :  { %1055 = vrot.lane.b32.xlu0 %v2434_v7, %s2540_s18 }
0x12cf   :  { %v2436_v8 = vpop.eup %2435 }
0x12d0   :  { %1057 = vrot.lane.b32.xlu1 %v2436_v8, %s2540_s18  ;;  %v2362_v8 = vld [vmem:[#allocation2 + $0xc0] sm:$0xff]  }
0x1340   :  { %v1056_v10 = vpop.permute.xlu0 %1055 }
0x1341   :  { %v1061_v11 = vmul.f32 %v1056_v10, %v1051_v9  ;;  %v2363_v9 = vld [vmem:[#allocation2 + $0xc8] sm:$0xff]   ;;  %v2364_v10 = vld [vmem:[#allocation2 + $0xd0] sm:$0xff]  }
0x1342   :  { %v1058_v13 = vpop.permute.xlu1 %1057 }
0x1343   :  { %v1062_v16 = vmul.f32 %v1058_v13, %v1052_v12  ;;  %v2783_v17 = vadd.f32 %v1063_v14, %v1061_v11  ;;  %v2365_v11 = vld [vmem:[#allocation2 + $0xd8] sm:$0xff]  }
0x1345   :  { %v2785_v18 = vadd.f32 %v1064_v15, %v1062_v16 }
0x1347   :  { %v1075_v19 = vpack.c.bf16 %v2785_v18, %v2783_v17 }
0x1349   :  { %1077 = vrot.lane.b32.xlu0 %v1075_v19, %s2540_s18 }
0x13bb   :  { %v1078_v20 = vpop.permute.xlu0 %1077 }
0x13bc   :  { %2236 = vmatpush3.bf16.msra.mxu0 %v1078_v20 }
0x13bd   :  { %2241 = vmatprep.subr.bf16.mxu0 %v2537_v0 }
0x13bf   :  { %2238 = vmatmul.mubr.msk.bf16.vlgmr.msra.gmra.mrb[24].mxu0 %vm185_vm4, %v2619_v29 }
0x13c0   :  { %2242 = vmatpush3.bf16.msra.mxu0 %v2358_v21  ;;  %2249 = vmatprep.mubr.msk.bf16.mxu0 %vm2538_vm0, %v2537_v0 }
0x13c1   :  { %2243 = vmatprep.subr.bf16.mxu0 %v2537_v0 }
0x13c4   :  { %2244 = vmatpush3.bf16.msra.mxu0 %v2359_v22 }
0x13c5   :  { %2245 = vmatprep.subr.bf16.mxu0 %v2537_v0 }
0x13c8   :  { %2246 = vmatpush3.bf16.msra.mxu0 %v2360_v23 }
0x13c9   :  { %2247 = vmatprep.subr.bf16.mxu0 %v2537_v0 }
0x13cc   :  { %2248 = vmatpush3.bf16.msra.mxu0 %v2361_v24 }
0x13cd   :  { %2271 = vmatprep.subr.bf16.mxu0 %v2537_v0 }
0x1492   :  { %v1114_v25 = vpop.f32.mrb[24].mxu0 }
0x1493   :  { %v2239_v26 = vpop.f32.mrb[25].mxu0  ;;  %v1121_v27 = vsel %vm121_vm3, %v1114_v25, %v2783_v17 }
0x1494   :  { %v1117_v40 = vpop.f32.mrb[26].mxu0 }
0x1495   :  { %v1122_v28 = vsel %vm121_vm3, %v1117_v40, %v2785_v18  ;;  %v2240_v30 = vpop.f32.mrb[27].mxu0 }
0x1496   :  { %v1123_v31 = vpack.c.bf16 %v1122_v28, %v1121_v27 }
0x1498   :  { %2250 = vmatmul.mubr.msk.bf16.vlgmr.msra.gmra.mrb[28].mxu0 %vm265_vm5, %v1123_v31 }
0x1499   :  { %2273 = vmatprep.mubr.msk.bf16.mxu0 %vm2538_vm0, %v2537_v0 }
0x156b   :  { %v1185_v32 = vpop.f32.mrb[28].mxu0 }
0x156c   :  { %v1186_v33 = vadd.f32 %v2738_v61, %v1185_v32  ;;  %v2251_v34 = vpop.f32.mrb[29].mxu0 }
0x156d   :  { %v1188_v35 = vpop.f32.mrb[30].mxu0 }
0x156e   :  { %v1189_v36 = vadd.f32 %v2738_v61, %v1188_v35  ;;  %1206 = vrot.lane.b32.xlu1 %v1186_v33, %s2539_s13  ;;  %v2252_v37 = vpop.f32.mrb[31].mxu0  ;;  %v2021_v38 = vmul.f32 -1.442695, %v1186_v33 }
0x1570   :  { %1208 = vrot.lane.b32.xlu0 %v1189_v36, %s2539_s13  ;;  %v2022_v39 = vmul.f32 -1.442695, %v1189_v36  ;;  %2437 = vpow2.f32 %v2021_v38 }
0x1572   :  { %2439 = vpow2.f32 %v2022_v39 }
0x157a   :  { %v2438_v41 = vpop.eup %2437 }
0x157b   :  { %v1198_v43 = vadd.f32 1.0, %v2438_v41 }
0x157c   :  { %v2440_v42 = vpop.eup %2439 }
0x157d   :  { %v1199_v44 = vadd.f32 1.0, %v2440_v42  ;;  %2441 = vrcp.f32 %v1198_v43 }
0x157f   :  { %2443 = vrcp.f32 %v1199_v44 }
0x1587   :  { %v2442_v45 = vpop.eup %2441 }
0x1588   :  { %v1226_v56 = vsub.f32 1.0, %v2442_v45  ;;  %v1238_v58 = vmul.f32 %v2442_v45, %v2783_v17 }
0x1589   :  { %v2444_v48 = vpop.eup %2443 }
0x158a   :  { %v1227_v60 = vsub.f32 1.0, %v2444_v48  ;;  %v1239_v1 = vmul.f32 %v2444_v48, %v2785_v18  ;;  %v2842_v18 = vld [vmem:[%s2958_s4 + $0x6] ss:$0 sm:$0xff] }
0x15e0   :  { %v1207_v46 = vpop.permute.xlu1 %1206 }
0x15e1   :  { %v1212_v47 = vmul.f32 %v2442_v45, %v1207_v46 }
0x15e2   :  { %v1209_v61 = vpop.permute.xlu0 %1208 }
0x15e3   :  { %v1213_v49 = vmul.f32 %v2444_v48, %v1209_v61  ;;  %1216 = vrot.lane.b32.xlu1 %v1212_v47, %s2535_s28 }
0x15e5   :  { %1218 = vrot.lane.b32.xlu0 %v1213_v49, %s2535_s28 }
0x1655   :  { %v1217_v50 = vpop.permute.xlu1 %1216 }
0x1656   :  { %v1222_v51 = vadd.f32 %v1217_v50, %v1186_v33 }
0x1657   :  { %v1219_v52 = vpop.permute.xlu0 %1218 }
0x1658   :  { %2445 = vtanh.f32 %v1222_v51  ;;  %v1223_v53 = vadd.f32 %v1219_v52, %v1189_v36 }
0x165a   :  { %2447 = vtanh.f32 %v1223_v53 }
0x1662   :  { %v2446_v54 = vpop.eup %2445 }
0x1663   :  { %1230 = vrot.lane.b32.xlu1 %v2446_v54, %s2540_s18 }
0x1664   :  { %v2448_v55 = vpop.eup %2447 }
0x1665   :  { %1232 = vrot.lane.b32.xlu0 %v2448_v55, %s2540_s18  ;;  %v2366_v55 = vld [vmem:[#allocation2 + $0xe0] sm:$0xff]  }
0x16d5   :  { %v1231_v57 = vpop.permute.xlu1 %1230 }
0x16d6   :  { %v1236_v59 = vmul.f32 %v1231_v57, %v1226_v56  ;;  %v2865_v56 = vld [vmem:[%s2955_s1] sm:$0xff]   ;;  %v2367_v57 = vld [vmem:[#allocation2 + $0xe8] sm:$0xff]  }
0x16d7   :  { %v1233_v62 = vpop.permute.xlu0 %1232 }
0x16d8   :  { %v1240_v63 = vadd.f32 %v1238_v58, %v1236_v59  ;;  %v1237_v2 = vmul.f32 %v1233_v62, %v1227_v60  ;;  %v2368_v58 = vld [vmem:[#allocation2 + $0xf0] sm:$0xff]   ;;  %v2369_v59 = vld [vmem:[#allocation2 + $0xf8] sm:$0xff]  }
0x16da   :  { %v1241_v3 = vadd.f32 %v1239_v1, %v1237_v2  ;;  %v2816_v4 = vmax.f32 %v1240_v63, 0.0 }
0x16dc   :  { %v2818_v5 = vmax.f32 %v1241_v3, 0.0 }
0x16de   :  { %v1257_v6 = vpack.c.bf16 %v2818_v5, %v2816_v4 }
0x16e0   :  { %1259 = vrot.lane.b32.xlu1 %v1257_v6, %s2540_s18 }
0x1752   :  { %v1260_v7 = vpop.permute.xlu1 %1259 }
0x1753   :  { %2254 = vmatpush3.bf16.msra.mxu1 %v1260_v7 }
0x1754   :  { %2259 = vmatprep.subr.bf16.mxu1 %v2537_v0 }
0x1756   :  { %2256 = vmatmul.mubr.msk.bf16.vlgmr.msra.gmra.mrb[24].mxu1 %vm185_vm4, %v2619_v29 }
0x1757   :  { %2260 = vmatpush3.bf16.msra.mxu1 %v2362_v8  ;;  %2267 = vmatprep.mubr.msk.bf16.mxu1 %vm2538_vm0, %v2537_v0 }
0x1758   :  { %2261 = vmatprep.subr.bf16.mxu1 %v2537_v0 }
0x175b   :  { %2262 = vmatpush3.bf16.msra.mxu1 %v2363_v9 }
0x175c   :  { %2263 = vmatprep.subr.bf16.mxu1 %v2537_v0 }
0x175f   :  { %2264 = vmatpush3.bf16.msra.mxu1 %v2364_v10 }
0x1760   :  { %2265 = vmatprep.subr.bf16.mxu1 %v2537_v0 }
0x1763   :  { %2266 = vmatpush3.bf16.msra.mxu1 %v2365_v11 }
0x1764   :  { %2289 = vmatprep.subr.bf16.mxu1 %v2537_v0 }
0x1829   :  { %v1296_v12 = vpop.f32.mrb[24].mxu1 }
0x182a   :  { %v2257_v29 = vpop.f32.mrb[25].mxu1  ;;  %v1303_v14 = vsel %vm121_vm3, %v1296_v12, %v2816_v4 }
0x182b   :  { %v1299_v13 = vpop.f32.mrb[26].mxu1 }
0x182c   :  { %v1304_v15 = vsel %vm121_vm3, %v1299_v13, %v2818_v5  ;;  %v2258_v16 = vpop.f32.mrb[27].mxu1 }
0x182d   :  { %v1305_v17 = vpack.c.bf16 %v1304_v15, %v1303_v14 }
0x182f   :  { %2268 = vmatmul.mubr.msk.bf16.vlgmr.msra.gmra.mrb[28].mxu1 %vm265_vm5, %v1305_v17 }
0x1830   :  { %2291 = vmatprep.mubr.msk.bf16.mxu1 %vm2538_vm0, %v2537_v0 }
0x1902   :  { %v1367_v19 = vpop.f32.mrb[28].mxu1 }
0x1903   :  { %v1368_v20 = vadd.f32 %v2842_v18, %v1367_v19  ;;  %v2269_v21 = vpop.f32.mrb[29].mxu1 }
0x1904   :  { %v1370_v22 = vpop.f32.mrb[30].mxu1 }
0x1905   :  { %v1371_v23 = vadd.f32 %v2842_v18, %v1370_v22  ;;  %1388 = vrot.lane.b32.xlu0 %v1368_v20, %s2539_s13  ;;  %v2270_v24 = vpop.f32.mrb[31].mxu1  ;;  %v2030_v25 = vmul.f32 -1.442695, %v1368_v20 }
0x1907   :  { %1390 = vrot.lane.b32.xlu1 %v1371_v23, %s2539_s13  ;;  %v2031_v26 = vmul.f32 -1.442695, %v1371_v23  ;;  %2449 = vpow2.f32 %v2030_v25 }
0x1909   :  { %2451 = vpow2.f32 %v2031_v26 }
0x1911   :  { %v2450_v40 = vpop.eup %2449 }
0x1912   :  { %v1380_v28 = vadd.f32 1.0, %v2450_v40 }
0x1913   :  { %v2452_v27 = vpop.eup %2451 }
0x1914   :  { %v1381_v30 = vadd.f32 1.0, %v2452_v27  ;;  %2453 = vrcp.f32 %v1380_v28 }
0x1916   :  { %2455 = vrcp.f32 %v1381_v30 }
0x191e   :  { %v2454_v31 = vpop.eup %2453 }
0x191f   :  { %v1408_v44 = vsub.f32 1.0, %v2454_v31  ;;  %v1420_v61 = vmul.f32 %v2454_v31, %v2816_v4 }
0x1920   :  { %v2456_v34 = vpop.eup %2455 }
0x1921   :  { %v1409_v47 = vsub.f32 1.0, %v2456_v34  ;;  %v1421_v49 = vmul.f32 %v2456_v34, %v2818_v5 }
0x1977   :  { %v1389_v32 = vpop.permute.xlu0 %1388 }
0x1978   :  { %v1394_v33 = vmul.f32 %v2454_v31, %v1389_v32 }
0x1979   :  { %v1391_v35 = vpop.permute.xlu1 %1390 }
0x197a   :  { %v1395_v36 = vmul.f32 %v2456_v34, %v1391_v35  ;;  %1398 = vrot.lane.b32.xlu0 %v1394_v33, %s2535_s28 }
0x197c   :  { %1400 = vrot.lane.b32.xlu1 %v1395_v36, %s2535_s28 }
0x19ec   :  { %v1399_v37 = vpop.permute.xlu0 %1398 }
0x19ed   :  { %v1404_v38 = vadd.f32 %v1399_v37, %v1368_v20 }
0x19ee   :  { %v1401_v39 = vpop.permute.xlu1 %1400 }
0x19ef   :  { %2457 = vtanh.f32 %v1404_v38  ;;  %v1405_v41 = vadd.f32 %v1401_v39, %v1371_v23 }
0x19f1   :  { %2459 = vtanh.f32 %v1405_v41 }
0x19f9   :  { %v2458_v42 = vpop.eup %2457 }
0x19fa   :  { %1412 = vrot.lane.b32.xlu0 %v2458_v42, %s2540_s18  ;;  %v2370_v42 = vld [vmem:[#allocation2 + $0x100] sm:$0xff]  }
0x19fb   :  { %v2460_v43 = vpop.eup %2459 }
0x19fc   :  { %1414 = vrot.lane.b32.xlu1 %v2460_v43, %s2540_s18  ;;  %v2371_v43 = vld [vmem:[#allocation2 + $0x108] sm:$0xff]  }
0x1a6c   :  { %v1413_v45 = vpop.permute.xlu0 %1412 }
0x1a6d   :  { %v1418_v46 = vmul.f32 %v1413_v45, %v1408_v44  ;;  %v2372_v44 = vld [vmem:[#allocation2 + $0x110] sm:$0xff]   ;;  %v2373_v45 = vld [vmem:[#allocation2 + $0x118] sm:$0xff]  }
0x1a6e   :  { %v1415_v48 = vpop.permute.xlu1 %1414 }
0x1a6f   :  { %v1419_v50 = vmul.f32 %v1415_v48, %v1409_v47  ;;  %v2854_v51 = vadd.f32 %v1420_v61, %v1418_v46 }
0x1a71   :  { %v2856_v52 = vadd.f32 %v1421_v49, %v1419_v50 }
0x1a73   :  { %v1432_v53 = vpack.c.bf16 %v2856_v52, %v2854_v51 }
0x1a75   :  { %1434 = vrot.lane.b32.xlu0 %v1432_v53, %s2540_s18 }
0x1ae7   :  { %v1435_v54 = vpop.permute.xlu0 %1434 }
0x1ae8   :  { %2272 = vmatpush3.bf16.msra.mxu0 %v1435_v54 }
0x1ae9   :  { %2277 = vmatprep.subr.bf16.mxu0 %v2537_v0 }
0x1aeb   :  { %2274 = vmatmul.mubr.msk.bf16.vlgmr.msra.gmra.mrb[32].mxu0 %vm185_vm4, %v2865_v56 }
0x1aec   :  { %2278 = vmatpush3.bf16.msra.mxu0 %v2366_v55  ;;  %2285 = vmatprep.mubr.msk.bf16.mxu0 %vm2538_vm0, %v2537_v0 }
0x1aed   :  { %2279 = vmatprep.subr.bf16.mxu0 %v2537_v0 }
0x1af0   :  { %2280 = vmatpush3.bf16.msra.mxu0 %v2367_v57 }
0x1af1   :  { %2281 = vmatprep.subr.bf16.mxu0 %v2537_v0 }
0x1af4   :  { %2282 = vmatpush3.bf16.msra.mxu0 %v2368_v58 }
0x1af5   :  { %2283 = vmatprep.subr.bf16.mxu0 %v2537_v0 }
0x1af8   :  { %2284 = vmatpush3.bf16.msra.mxu0 %v2369_v59 }
0x1af9   :  { %2307 = vmatprep.subr.bf16.mxu0 %v2537_v0 }
0x1bbe   :  { %v1471_v60 = vpop.f32.mrb[32].mxu0 }
0x1bbf   :  { %v2275_v62 = vpop.f32.mrb[33].mxu0  ;;  %v1478_v1 = vsel %vm121_vm3, %v1471_v60, %v2854_v51 }
0x1bc0   :  { %v1474_v63 = vpop.f32.mrb[34].mxu0 }
0x1bc1   :  { %v1479_v2 = vsel %vm121_vm3, %v1474_v63, %v2856_v52  ;;  %v2276_v3 = vpop.f32.mrb[35].mxu0 }
0x1bc2   :  { %v1480_v4 = vpack.c.bf16 %v1479_v2, %v1478_v1 }
0x1bc4   :  { %2286 = vmatmul.mubr.msk.bf16.vlgmr.msra.gmra.mrb[36].mxu0 %vm265_vm5, %v1480_v4 }
0x1bc5   :  { %2311 = vmatprep.mubr.msk.bf16.mxu0 %vm2538_vm0, %v2537_v0 }
0x1c97   :  { %v1542_v5 = vpop.f32.mrb[36].mxu0 }
0x1c98   :  { %v1543_v6 = vadd.f32 %v2842_v18, %v1542_v5  ;;  %v2287_v7 = vpop.f32.mrb[37].mxu0 }
0x1c99   :  { %v1545_v8 = vpop.f32.mrb[38].mxu0 }
0x1c9a   :  { %v1546_v9 = vadd.f32 %v2842_v18, %v1545_v8  ;;  %1563 = vrot.lane.b32.xlu1 %v1543_v6, %s2539_s13  ;;  %v2288_v10 = vpop.f32.mrb[39].mxu0  ;;  %v2038_v11 = vmul.f32 -1.442695, %v1543_v6 }
0x1c9c   :  { %1565 = vrot.lane.b32.xlu0 %v1546_v9, %s2539_s13  ;;  %v2039_v12 = vmul.f32 -1.442695, %v1546_v9  ;;  %2461 = vpow2.f32 %v2038_v11  ;;  %v2374_v11 = vld [vmem:[#allocation2 + $0x140] sm:$0xff]  }
0x1c9d   :  { %2308 = vmatpush3.bf16.msra.mxu0 %v2374_v11 }
0x1c9e   :  { %2463 = vpow2.f32 %v2039_v12  ;;  %2309 = vmatprep.subr.bf16.mxu0 %v2537_v0 }
0x1ca6   :  { %v2462_v29 = vpop.eup %2461 }
0x1ca7   :  { %v1555_v14 = vadd.f32 1.0, %v2462_v29  ;;  %v2375_v29 = vld [vmem:[#allocation2 + $0x148] sm:$0xff]  }
0x1ca8   :  { %v2464_v13 = vpop.eup %2463  ;;  %2310 = vmatpush3.bf16.msra.mxu0 %v2375_v29 }
0x1ca9   :  { %v1556_v15 = vadd.f32 1.0, %v2464_v13  ;;  %2465 = vrcp.f32 %v1555_v14  ;;  %2315 = vmatprep.subr.bf16.mxu0 %v2537_v0 }
0x1cab   :  { %2467 = vrcp.f32 %v1556_v15 }
0x1cb3   :  { %v2466_v16 = vpop.eup %2465 }
0x1cb4   :  { %v1583_v28 = vsub.f32 1.0, %v2466_v16  ;;  %v1595_v34 = vmul.f32 %v2466_v16, %v2854_v51 }
0x1cb5   :  { %v2468_v20 = vpop.eup %2467 }
0x1cb6   :  { %v1584_v32 = vsub.f32 1.0, %v2468_v20  ;;  %v1596_v35 = vmul.f32 %v2468_v20, %v2856_v52 }
0x1d0c   :  { %v1564_v17 = vpop.permute.xlu1 %1563 }
0x1d0d   :  { %v1569_v19 = vmul.f32 %v2466_v16, %v1564_v17 }
0x1d0e   :  { %v1566_v21 = vpop.permute.xlu0 %1565 }
0x1d0f   :  { %v1570_v22 = vmul.f32 %v2468_v20, %v1566_v21  ;;  %1573 = vrot.lane.b32.xlu1 %v1569_v19, %s2535_s28 }
0x1d11   :  { %1575 = vrot.lane.b32.xlu0 %v1570_v22, %s2535_s28 }
0x1d81   :  { %v1574_v23 = vpop.permute.xlu1 %1573 }
0x1d82   :  { %v1579_v24 = vadd.f32 %v1574_v23, %v1543_v6 }
0x1d83   :  { %v1576_v25 = vpop.permute.xlu0 %1575 }
0x1d84   :  { %2469 = vtanh.f32 %v1579_v24  ;;  %v1580_v26 = vadd.f32 %v1576_v25, %v1546_v9 }
0x1d86   :  { %2471 = vtanh.f32 %v1580_v26 }
0x1d8e   :  { %v2470_v40 = vpop.eup %2469 }
0x1d8f   :  { %1587 = vrot.lane.b32.xlu1 %v2470_v40, %s2540_s18 }
0x1d90   :  { %v2472_v27 = vpop.eup %2471 }
0x1d91   :  { %1589 = vrot.lane.b32.xlu0 %v2472_v27, %s2540_s18 }
0x1e01   :  { %v1588_v30 = vpop.permute.xlu1 %1587 }
0x1e02   :  { %v1593_v31 = vmul.f32 %v1588_v30, %v1583_v28  ;;  %v2376_v28 = vld [vmem:[#allocation2 + $0x150] sm:$0xff]   ;;  %v2048_v30 = vld [vmem:[%s2958_s4 + $0x2] ss:$0 sm:$0xff] }
0x1e03   :  { %v1590_v33 = vpop.permute.xlu0 %1589 }
0x1e04   :  { %v1594_v36 = vmul.f32 %v1590_v33, %v1584_v32  ;;  %v2892_v37 = vadd.f32 %v1595_v34, %v1593_v31 }
0x1e06   :  { %v2894_v38 = vadd.f32 %v1596_v35, %v1594_v36 }
0x1e08   :  { %v1607_v39 = vpack.c.bf16 %v2894_v38, %v2892_v37 }
0x1e0a   :  { %1609 = vrot.lane.b32.xlu1 %v1607_v39, %s2540_s18 }
0x1e7c   :  { %v1610_v41 = vpop.permute.xlu1 %1609 }
0x1e7d   :  { %2290 = vmatpush3.bf16.msra.mxu1 %v1610_v41 }
0x1e7e   :  { %2295 = vmatprep.subr.bf16.mxu1 %v2537_v0 }
0x1e80   :  { %2292 = vmatmul.mubr.msk.bf16.vlgmr.msra.gmra.mrb[32].mxu1 %vm185_vm4, %v2865_v56 }
0x1e81   :  { %2296 = vmatpush3.bf16.msra.mxu1 %v2370_v42  ;;  %2303 = vmatprep.mubr.msk.bf16.mxu1 %vm2538_vm0, %v2537_v0 }
0x1e82   :  { %2297 = vmatprep.subr.bf16.mxu1 %v2537_v0 }
0x1e85   :  { %2298 = vmatpush3.bf16.msra.mxu1 %v2371_v43 }
0x1e86   :  { %2299 = vmatprep.subr.bf16.mxu1 %v2537_v0 }
0x1e89   :  { %2300 = vmatpush3.bf16.msra.mxu1 %v2372_v44 }
0x1e8a   :  { %2301 = vmatprep.subr.bf16.mxu1 %v2537_v0 }
0x1e8d   :  { %2302 = vmatpush3.bf16.msra.mxu1 %v2373_v45 }
0x1e8e   :  { %2321 = vmatprep.subr.bf16.mxu1 %v2537_v0 }
0x1f53   :  { %v1646_v46 = vpop.f32.mrb[32].mxu1 }
0x1f54   :  { %v2293_v47 = vpop.f32.mrb[33].mxu1  ;;  %v1653_v61 = vsel %vm121_vm3, %v1646_v46, %v2892_v37 }
0x1f55   :  { %v1649_v48 = vpop.f32.mrb[34].mxu1 }
0x1f56   :  { %v1654_v49 = vsel %vm121_vm3, %v1649_v48, %v2894_v38  ;;  %v2294_v50 = vpop.f32.mrb[35].mxu1  ;;  %v40_v48 = vld [vmem:[%s2956_s2] sm:$0x1] }
0x1f57   :  { %v1655_v51 = vpack.c.bf16 %v1654_v49, %v1653_v61 }
0x1f59   :  { %2304 = vmatmul.mubr.msk.bf16.vlgmr.msra.gmra.mrb[36].mxu1 %vm265_vm5, %v1655_v51 }
0x1f5a   :  { %2323 = vmatprep.mubr.msk.bf16.mxu1 %vm2538_vm0, %v2537_v0 }
0x202c   :  { %v1717_v52 = vpop.f32.mrb[36].mxu1 }
0x202d   :  { %v1718_v53 = vadd.f32 %v2842_v18, %v1717_v52  ;;  %v2305_v54 = vpop.f32.mrb[37].mxu1 }
0x202e   :  { %v1720_v55 = vpop.f32.mrb[38].mxu1 }
0x202f   :  { %v1721_v56 = vadd.f32 %v2842_v18, %v1720_v55  ;;  %1738 = vrot.lane.b32.xlu0 %v1718_v53, %s2539_s13  ;;  %v2306_v57 = vpop.f32.mrb[39].mxu1  ;;  %v2046_v58 = vmul.f32 -1.442695, %v1718_v53 }
0x2031   :  { %1740 = vrot.lane.b32.xlu1 %v1721_v56, %s2539_s13  ;;  %v2047_v59 = vmul.f32 -1.442695, %v1721_v56  ;;  %2473 = vpow2.f32 %v2046_v58 }
0x2033   :  { %2475 = vpow2.f32 %v2047_v59 }
0x203b   :  { %v2474_v60 = vpop.eup %2473 }
0x203c   :  { %v1730_v63 = vadd.f32 1.0, %v2474_v60 }
0x203d   :  { %v2476_v62 = vpop.eup %2475 }
0x203e   :  { %v1731_v1 = vadd.f32 1.0, %v2476_v62  ;;  %2477 = vrcp.f32 %v1730_v63 }
0x2040   :  { %2479 = vrcp.f32 %v1731_v1 }
0x2048   :  { %v2478_v2 = vpop.eup %2477 }
0x2049   :  { %v1758_v14 = vsub.f32 1.0, %v2478_v2  ;;  %v1770_v16 = vmul.f32 %v2478_v2, %v2892_v37 }
0x204a   :  { %v2480_v5 = vpop.eup %2479 }
0x204b   :  { %v1759_v19 = vsub.f32 1.0, %v2480_v5  ;;  %v1771_v22 = vmul.f32 %v2480_v5, %v2894_v38 }
0x20a1   :  { %v1739_v3 = vpop.permute.xlu0 %1738 }
0x20a2   :  { %v1744_v4 = vmul.f32 %v2478_v2, %v1739_v3 }
0x20a3   :  { %v1741_v18 = vpop.permute.xlu1 %1740 }
0x20a4   :  { %v1745_v6 = vmul.f32 %v2480_v5, %v1741_v18  ;;  %1748 = vrot.lane.b32.xlu0 %v1744_v4, %s2535_s28 }
0x20a6   :  { %1750 = vrot.lane.b32.xlu1 %v1745_v6, %s2535_s28 }
0x2116   :  { %v1749_v7 = vpop.permute.xlu0 %1748 }
0x2117   :  { %v1754_v8 = vadd.f32 %v1749_v7, %v1718_v53 }
0x2118   :  { %v1751_v9 = vpop.permute.xlu1 %1750 }
0x2119   :  { %2481 = vtanh.f32 %v1754_v8  ;;  %v1755_v10 = vadd.f32 %v1751_v9, %v1721_v56 }
0x211b   :  { %2483 = vtanh.f32 %v1755_v10 }
0x2123   :  { %v2482_v12 = vpop.eup %2481 }
0x2124   :  { %1762 = vrot.lane.b32.xlu0 %v2482_v12, %s2540_s18 }
0x2125   :  { %v2484_v13 = vpop.eup %2483 }
0x2126   :  { %1764 = vrot.lane.b32.xlu1 %v2484_v13, %s2540_s18 }
0x2196   :  { %v1763_v15 = vpop.permute.xlu0 %1762 }
0x2197   :  { %v1768_v17 = vmul.f32 %v1763_v15, %v1758_v14 }
0x2198   :  { %v1765_v20 = vpop.permute.xlu1 %1764 }
0x2199   :  { %v1772_v21 = vadd.f32 %v1770_v16, %v1768_v17  ;;  %v1769_v23 = vmul.f32 %v1765_v20, %v1759_v19 }
0x219b   :  { %v1773_v24 = vadd.f32 %v1771_v22, %v1769_v23  ;;  %v1774_v25 = vmax.f32 %v1772_v21, 0.0 }
0x219d   :  { %v1775_v26 = vmax.f32 %v1773_v24, 0.0 }
0x219f   :  { %v1780_v40 = vpack.c.bf16 %v1775_v26, %v1774_v25 }
0x21a1   :  { %1787 = vrot.lane.b32.xlu0 %v1780_v40, %s2540_s18 }
0x2213   :  { %v1788_v27 = vpop.permute.xlu0 %1787 }
0x2214   :  { %2312 = vmatmul.mubr.msk.bf16.vlgmr.msra.gmra.mrb[40].mxu0 %vm121_vm3, %v1788_v27 }
0x2215   :  { %2317 = vmatprep.mubr.msk.bf16.mxu0 %vm2538_vm0, %v2537_v0  ;;  %2316 = vmatpush3.bf16.msra.mxu0 %v2376_v28  ;;  %v2052_v0 = vld [vmem:[%s2958_s4 + $0x3] ss:$0 sm:$0xff]  ;;  %s2508_s4 = scalar_lea.vmem %s1958_s6, 32 }
0x2216   :  { %p2509_p8 = scmp.ne.s32.totalorder %s1958_s6, %s2508_s4  ;;  %p2514_p10 = scmp.lt.s32.totalorder %s2508_s4, %s2508_s4 }
0x2218   :  { %p2515_p11 = por %p2514_p10, %p2513_p9 }
0x221a   :  { %p2516_p12 = pnand %p2515_p11, %p2509_p8 }
0x22e7   :  { %v1838_v31 = vpop.f32.mrb[40].mxu0 }
0x22e8   :  { %v1839_v32 = vadd.f32 %v2048_v30, %v1838_v31  ;;  %v2313_v33 = vpop.f32.mrb[41].mxu0 }
0x22e9   :  { %v1841_v34 = vpop.f32.mrb[42].mxu0 }
0x22ea   :  { %v1842_v35 = vadd.f32 %v2048_v30, %v1841_v34  ;;  %v2314_v36 = vpop.f32.mrb[43].mxu0  ;;  %v1845_v37 = vmax.f32 %v1839_v32, 0.0 }
0x22ec   :  { %v1846_v38 = vmax.f32 %v1842_v35, 0.0 }
0x22ee   :  { %v1849_v39 = vpack.c.bf16 %v1846_v38, %v1845_v37 }
0x22f0   :  { %2318 = vmatmul.mubr.msk.bf16.vlgmr.msra.gmra.mrb[44].mxu0 %vm185_vm4, %v1849_v39 }
0x23c3   :  { %v1898_v41 = vpop.f32.mrb[44].mxu0 }
0x23c4   :  { %v2319_v42 = vpop.f32.mrb[45].mxu0  ;;  %v1899_v44 = vadd.f32 %v2052_v0, %v1898_v41 }
0x23c5   :  { %v1901_v43 = vpop.f32.mrb[46].mxu0 }
0x23c6   :  { %v1902_v45 = vadd.f32 %v2052_v0, %v1901_v43  ;;  %v2320_v46 = vpop.f32.mrb[47].mxu0 }
0x23c8   :  { %v1905_v47 = vpack.c.bf16 %v1902_v45, %v1899_v44 }
0x23ca   :  { %2322 = vmatpush3.bf16.msra.mxu1 %v1905_v47 }
0x23cd   :  { %2324 = vmatmul.mubr.msk.bf16.vlgmr.msra.gmra.mrb[40].mxu1 %vm185_vm4, %v40_v48 }
0x24a0   :  { %v1943_v61 = vpop.f32.mrb[40].mxu1 }
0x24a1   :  { %v2325_v49 = vpop.f32.mrb[41].mxu1  ;;  %1950 = vst.msk [vmem:[#allocation5] sm:$0x3] %vm1949_vm6, %v1943_v61 }
0x24a2   :  { %v1946_v50 = vpop.f32.mrb[42].mxu1 }
0x24a3   :  { %2519 = shalt.err (!%p2516_p12)
}
0x24a4   :  { %s2520_s2 = scalar_lea.hbm %s2959_s5, 32 }
0x24a5   :  { %p2521_p13 = scmp.ne.s32.totalorder %s2959_s5, %s2520_s2  ;;  %p2524_p0 = scmp.lt.u32.totalorder %s2520_s2, %s2959_s5 }
0x24a7   :  { %p2526_p1 = pnand %p2524_p0, %p2521_p13 }
0x24a9   :  { %2529 = shalt.err (!%p2526_p1)
}
0x24aa   :  { %1960 = dma.vmem_to_hbm [thread:$0]  %s1958_s6, 32, %s2959_s5, [#allocation4]   ;;  %v2326_v51 = vpop.f32.mrb[43].mxu1 }
0x24ab   :  { %2532 = dma.done.wait [#allocation4], 32  }
0x24ac   :  { %2533 = vsyncadd [#allocation4], 4294967264 }
0x24ad   :  { %1964 = vsyncpa [#allocation3], 1 }
0x24ae   :  { %1965 = vsyncpa [#allocation4], 1 }

</bundles_post_ra>
